<compile_context>
chip_gen: v7x
topology: tpu7x:2x2x1
jax: 0.10.0
libtpu: 0.0.40
codegen_flags: <defaults>
</compile_context>

<pallas_src>
import functools

import jax
import jax.numpy as jnp
from jax import lax
from jax.experimental import pallas as pl
from jax.experimental.pallas import tpu as pltpu


def _gru_cell(gx, gh, b_hn, h, H):
    """One GRU update; gx already folds b_ih (all gates) + b_hh (r, z gates)."""
    r = jax.nn.sigmoid(gx[:, 0:H] + gh[:, 0:H])
    z = jax.nn.sigmoid(gx[:, H:2 * H] + gh[:, H:2 * H])
    n = jnp.tanh(gx[:, 2 * H:3 * H] + r * (gh[:, 2 * H:3 * H] + b_hn))
    return (1.0 - z) * n + z * h


def _bigru_kernel(gx_f_ref, gx_b_ref, whh_ref, bhn_ref,
                  out_f_ref, out_b_ref, h_ref):
    """One (batch-block, time-chunk) step of the fused bidirectional GRU.

    Refs (block shapes):
      gx_f_ref : (Bb, Tc, 3H) f32   forward-direction input gates for chunk i
      gx_b_ref : (Bb, Tc, 3H) f32   backward-direction gates for chunk nc-1-i
      whh_ref  : (2, H, 3H)  bf16   hidden->hidden weights [fwd, bwd], (r,z,n)
      bhn_ref  : (2, 1, H)   f32    hidden n-gate bias per direction
      out_f_ref: (Bb, Tc, H) f32    forward hidden states for chunk i
      out_b_ref: (Bb, Tc, H) f32    backward hidden states for chunk nc-1-i
      h_ref    : (2, Bb, H)  f32    VMEM scratch: carried [h_fwd, h_bwd]
    """
    Tc = gx_f_ref.shape[1]
    H = whh_ref.shape[1]

    # New recurrence starts at the first time chunk of every batch block.
    @pl.when(pl.program_id(1) == 0)
    def _init():
        h_ref[...] = jnp.zeros_like(h_ref)

    # Weights / biases stay VMEM-resident across all grid steps (constant
    # index_map); hoist the loads out of the time loop.
    whh_f = whh_ref[0]          # (H, 3H) bf16
    whh_b = whh_ref[1]
    bhn_f = bhn_ref[0]          # (1, H) f32
    bhn_b = bhn_ref[1]

    hf = h_ref[0]               # (Bb, H) f32, carried across chunks
    hb = h_ref[1]

    # Bounded unroll: static loop over ONE time chunk only. All indices are
    # static, so B-major blocks need no dynamic sublane slicing.
    for t in range(Tc):
        rt = Tc - 1 - t                         # backward stream's local time
        gxf = gx_f_ref[:, t, :]                 # (Bb, 3H)
        gxb = gx_b_ref[:, rt, :]
        # bf16 MXU operands, f32 accumulate; the two chains are independent so
        # their MXU/EUP latencies overlap on a single TensorCore.
        ghf = jnp.dot(hf.astype(jnp.bfloat16), whh_f,
                      preferred_element_type=jnp.float32)
        ghb = jnp.dot(hb.astype(jnp.bfloat16), whh_b,
                      preferred_element_type=jnp.float32)
        hf = _gru_cell(gxf, ghf, bhn_f, hf, H)
        hb = _gru_cell(gxb, ghb, bhn_b, hb, H)
        out_f_ref[:, t, :] = hf                 # direct per-step writeback
        out_b_ref[:, rt, :] = hb

    h_ref[0] = hf                               # carry to the next chunk
    h_ref[1] = hb


def _pick_time_chunk(T, target=64):
    """Largest multiple-of-8 divisor of T that is <= target, else T."""
    best = None
    c = 8
    while c <= min(T, target):
        if T % c == 0:
            best = c
        c += 8
    return best if best is not None else T


@functools.partial(jax.jit, static_argnames=("time_chunk",))
def word_lstm_forward(x_btd, params, time_chunk=None):
    """Bidirectional GRU encoder: (B, T, D) -> (B, T, 2*H), batch_first."""
    w_ih = params["w_ih"]          # (2, D, 3H)
    w_hh = params["w_hh"]          # (2, H, 3H)
    b_ih = params["b_ih"]          # (2, 1, 3H)
    b_hh = params["b_hh"]          # (2, 1, 3H)
    B, T, D = x_btd.shape
    H = w_hh.shape[1]

    Tc = time_chunk if time_chunk is not None else _pick_time_chunk(T)
    assert T % Tc == 0 and (Tc % 8 == 0 or Tc == T), (T, Tc)
    nc = T // Tc
    nb = 2 if (B >= 2 and B % 2 == 0) else 1     # batch blocks ("parallel")
    Bb = B // nb

    # Fold b_ih (all gates) + b_hh (r, z gates) into the hoisted input gates;
    # the n-gate hidden bias must stay under the reset gate inside the kernel.
    b_fold = b_ih + jnp.concatenate(
        [b_hh[:, :, :2 * H], jnp.zeros_like(b_hh[:, :, 2 * H:])], axis=-1)
    b_hn = b_hh[:, :, 2 * H:]                                   # (2, 1, H)

    # Hoisted input projection for BOTH directions in one dense bf16 matmul
    # (M = B*T, N = 6H), off the serial recurrence path; f32 accumulate.
    # (Gates kept f32; storing them bf16 would halve streaming traffic at a
    # small precision cost.)
    w_ih_cat = jnp.concatenate([w_ih[0], w_ih[1]], axis=-1)     # (D, 6H)
    gates = jnp.einsum("btd,dk->btk",
                       x_btd.astype(jnp.bfloat16),
                       w_ih_cat.astype(jnp.bfloat16),
                       preferred_element_type=jnp.float32)       # (B, T, 6H)
    gates_f = gates[..., :3 * H] + b_fold[0]                     # (B, T, 3H)
    gates_b = gates[..., 3 * H:] + b_fold[1]

    w_hh_bf16 = w_hh.astype(jnp.bfloat16)

    out_f, out_b = pl.pallas_call(
        _bigru_kernel,
        out_shape=(jax.ShapeDtypeStruct((B, T, H), jnp.float32),
                   jax.ShapeDtypeStruct((B, T, H), jnp.float32)),
        grid_spec=pltpu.PrefetchScalarGridSpec(
            num_scalar_prefetch=0,
            grid=(nb, nc),
            in_specs=[
                # forward gates: chunk i ; backward gates: chunk nc-1-i
                pl.BlockSpec((Bb, Tc, 3 * H), lambda b, i: (b, i, 0)),
                pl.BlockSpec((Bb, Tc, 3 * H), lambda b, i: (b, nc - 1 - i, 0)),
                pl.BlockSpec((2, H, 3 * H), lambda b, i: (0, 0, 0)),
                pl.BlockSpec((2, 1, H), lambda b, i: (0, 0, 0)),
            ],
            out_specs=[
                pl.BlockSpec((Bb, Tc, H), lambda b, i: (b, i, 0)),
                pl.BlockSpec((Bb, Tc, H), lambda b, i: (b, nc - 1 - i, 0)),
            ],
            scratch_shapes=[pltpu.VMEM((2, Bb, H), jnp.float32)],
        ),
        compiler_params=pltpu.CompilerParams(
            dimension_semantics=("parallel", "arbitrary"),
            vmem_limit_bytes=32 * 1024 * 1024,
        ),
    )(gates_f, gates_b, w_hh_bf16, b_hn)

    # Only wrapper-side data movement: one concat (no transposes anywhere).
    return jnp.concatenate([out_f, out_b], axis=-1)              # (B, T, 2H)


def _gru_reference(x_btd, w_ih, w_hh, b_ih, b_hh, reverse=False):
    """Pure-JAX GRU reference (PyTorch semantics), gate order (r, z, n).

    Matches the kernel's precision policy: bf16 MXU operands, f32 accumulate,
    f32 gate math.
    """
    x_tbd = jnp.transpose(x_btd, (1, 0, 2))
    if reverse:
        x_tbd = x_tbd[::-1]
    B = x_tbd.shape[1]
    H = w_hh.shape[0]
    w_ih_bf = w_ih.astype(jnp.bfloat16)
    w_hh_bf = w_hh.astype(jnp.bfloat16)

    def step(h, x):
        gi = jnp.dot(x.astype(jnp.bfloat16), w_ih_bf,
                     preferred_element_type=jnp.float32) + b_ih
        gh = jnp.dot(h.astype(jnp.bfloat16), w_hh_bf,
                     preferred_element_type=jnp.float32) + b_hh
        r = jax.nn.sigmoid(gi[:, :H] + gh[:, :H])
        z = jax.nn.sigmoid(gi[:, H:2 * H] + gh[:, H:2 * H])
        n = jnp.tanh(gi[:, 2 * H:] + r * gh[:, 2 * H:])
        h_new = (1.0 - z) * n + z * h
        return h_new, h_new

    h0 = jnp.zeros((B, H), jnp.float32)
    _, ys = lax.scan(step, h0, x_tbd)
    if reverse:
        ys = ys[::-1]
    return jnp.transpose(ys, (1, 0, 2))


def init_params(key, input_dim, hidden_dim):
    """Uniform(-1/sqrt(H), 1/sqrt(H)) init mimicking PyTorch; gate-packed (r,z,n),
    direction-stacked along the leading axis ([forward, backward])."""
    bound = 1.0 / jnp.sqrt(jnp.float32(hidden_dim))
    names_shapes = {
        "w_ih": (2, input_dim, 3 * hidden_dim),
        "w_hh": (2, hidden_dim, 3 * hidden_dim),
        "b_ih": (2, 1, 3 * hidden_dim),
        "b_hh": (2, 1, 3 * hidden_dim),
    }
    params = {}
    for name, shape in names_shapes.items():
        key, sub = jax.random.split(key)
        params[name] = jax.random.uniform(
            sub, shape, jnp.float32, minval=-bound, maxval=bound)
    return params


if __name__ == "__main__":
    # batch, seq, input_dim, hidden_dim — T=16 / Tc=8 exercises 2 time chunks
    # (carried hidden state) and 2 batch blocks (parallel grid axis).
    B, T, D, H = 2, 16, 16, 32

    key = jax.random.PRNGKey(0)
    k_x, k_p = jax.random.split(key)
    x = jax.random.normal(k_x, (B, T, D), jnp.float32)
    params = init_params(k_p, D, H)

    out = word_lstm_forward(x, params, time_chunk=8)
    out = jax.block_until_ready(out)
    assert out.shape == (B, T, 2 * H), out.shape

    # Pure-JAX reference check (lax.scan, same bf16-operand precision policy).
    ref_f = _gru_reference(x, params["w_ih"][0], params["w_hh"][0],
                           params["b_ih"][0], params["b_hh"][0], reverse=False)
    ref_b = _gru_reference(x, params["w_ih"][1], params["w_hh"][1],
                           params["b_ih"][1], params["b_hh"][1], reverse=True)
    ref = jnp.concatenate([ref_f, ref_b], axis=-1)

    err = float(jnp.max(jnp.abs(out - ref)))
    assert jnp.allclose(out, ref, atol=2e-2, rtol=2e-2), err

    print("KERNEL_OK")
</pallas_src>

<mosaic_0001>
module attributes {stable_mosaic.version = 11 : i64} {
  func.func @_bigru_kernel(%arg0: i32, %arg1: i32, %arg2: memref<1x8x96xf32, #tpu.memory_space<vmem>>, %arg3: memref<1x8x96xf32, #tpu.memory_space<vmem>>, %arg4: memref<2x32x96xbf16, #tpu.memory_space<vmem>>, %arg5: memref<2x1x32xf32, #tpu.memory_space<vmem>>, %arg6: memref<1x8x32xf32, #tpu.memory_space<vmem>>, %arg7: memref<1x8x32xf32, #tpu.memory_space<vmem>>, %arg8: memref<2x1x32xf32, #tpu.memory_space<vmem>>) attributes {dimension_semantics = [#tpu.dimension_semantics<parallel>, #tpu.dimension_semantics<arbitrary>], iteration_bounds = array<i64: 2, 2>, scalar_prefetch = 0 : i64, scratch_operands = 1 : i64, tpu.core_type = #tpu.core_type<tc>, window_params = [{transform_indices = @transform_0, window_bounds = array<i64: 1, 8, 96>}, {transform_indices = @transform_1, window_bounds = array<i64: 1, 8, 96>}, {pipeline_mode = #tpu.pipeline_mode<synchronous>, transform_indices = @transform_2, window_bounds = array<i64: 2, 32, 96>}, {pipeline_mode = #tpu.pipeline_mode<synchronous>, transform_indices = @transform_3, window_bounds = array<i64: 2, 1, 32>}, {transform_indices = @transform_4, window_bounds = array<i64: 1, 8, 32>}, {transform_indices = @transform_5, window_bounds = array<i64: 1, 8, 32>}]} {
    %c0_i32 = arith.constant 0 : i32
    %0 = arith.cmpi eq, %arg1, %c0_i32 : i32
    %1 = arith.extui %0 : i1 to i32
    %c0_i32_0 = arith.constant 0 : i32
    %2 = arith.cmpi ne, %1, %c0_i32_0 : i32
    scf.if %2 {
      %cst_176 = arith.constant 0.000000e+00 : f32
      %565 = vector.broadcast %cst_176 : f32 to vector<2x1x32xf32>
      %c0_177 = arith.constant 0 : index
      %c0_178 = arith.constant 0 : index
      %c0_179 = arith.constant 0 : index
      %566 = vector.load %arg8[%c0_177, %c0_178, %c0_179] : memref<2x1x32xf32, #tpu.memory_space<vmem>>, vector<2x1x32xf32>
      tpu.vector_store %arg8[%c0_177, %c0_178, %c0_179], %565 {strides = array<i32>} : memref<2x1x32xf32, #tpu.memory_space<vmem>>, vector<2x1x32xf32>,
    } else {
    }
    %c0 = arith.constant 0 : index
    %c0_1 = arith.constant 0 : index
    %c0_2 = arith.constant 0 : index
    %3 = vector.load %arg4[%c0, %c0_1, %c0_2] : memref<2x32x96xbf16, #tpu.memory_space<vmem>>, vector<1x32x96xbf16>
    %4 = vector.shape_cast %3 : vector<1x32x96xbf16> to vector<32x96xbf16>
    %c1 = arith.constant 1 : index
    %c0_3 = arith.constant 0 : index
    %c0_4 = arith.constant 0 : index
    %5 = vector.load %arg4[%c1, %c0_3, %c0_4] : memref<2x32x96xbf16, #tpu.memory_space<vmem>>, vector<1x32x96xbf16>
    %6 = vector.shape_cast %5 : vector<1x32x96xbf16> to vector<32x96xbf16>
    %c0_5 = arith.constant 0 : index
    %c0_6 = arith.constant 0 : index
    %c0_7 = arith.constant 0 : index
    %7 = vector.load %arg5[%c0_5, %c0_6, %c0_7] : memref<2x1x32xf32, #tpu.memory_space<vmem>>, vector<1x1x32xf32>
    %8 = vector.shape_cast %7 : vector<1x1x32xf32> to vector<1x32xf32>
    %c1_8 = arith.constant 1 : index
    %c0_9 = arith.constant 0 : index
    %c0_10 = arith.constant 0 : index
    %9 = vector.load %arg5[%c1_8, %c0_9, %c0_10] : memref<2x1x32xf32, #tpu.memory_space<vmem>>, vector<1x1x32xf32>
    %10 = vector.shape_cast %9 : vector<1x1x32xf32> to vector<1x32xf32>
    %c0_11 = arith.constant 0 : index
    %c0_12 = arith.constant 0 : index
    %c0_13 = arith.constant 0 : index
    %11 = vector.load %arg8[%c0_11, %c0_12, %c0_13] : memref<2x1x32xf32, #tpu.memory_space<vmem>>, vector<1x1x32xf32>
    %12 = vector.shape_cast %11 : vector<1x1x32xf32> to vector<1x32xf32>
    %c1_14 = arith.constant 1 : index
    %c0_15 = arith.constant 0 : index
    %c0_16 = arith.constant 0 : index
    %13 = vector.load %arg8[%c1_14, %c0_15, %c0_16] : memref<2x1x32xf32, #tpu.memory_space<vmem>>, vector<1x1x32xf32>
    %14 = vector.shape_cast %13 : vector<1x1x32xf32> to vector<1x32xf32>
    %c0_17 = arith.constant 0 : index
    %c0_18 = arith.constant 0 : index
    %c0_19 = arith.constant 0 : index
    %15 = vector.load %arg2[%c0_17, %c0_18, %c0_19] : memref<1x8x96xf32, #tpu.memory_space<vmem>>, vector<1x1x96xf32>
    %16 = vector.shape_cast %15 : vector<1x1x96xf32> to vector<1x96xf32>
    %c0_20 = arith.constant 0 : index
    %c7 = arith.constant 7 : index
    %c0_21 = arith.constant 0 : index
    %17 = vector.load %arg3[%c0_20, %c7, %c0_21] : memref<1x8x96xf32, #tpu.memory_space<vmem>>, vector<1x1x96xf32>
    %18 = vector.shape_cast %17 : vector<1x1x96xf32> to vector<1x96xf32>
    %19 = arith.truncf %12 : vector<1x32xf32> to vector<1x32xbf16>
    %cst = arith.constant dense<0.000000e+00> : vector<1x96xf32>
    %20 = tpu.matmul %19, %4, %cst {dimension_numbers = #tpu.dot_dimension_numbers<[1], [0], [0], [1], [0, 0, 1, 1], [], []>} : vector<1x32xbf16>, vector<32x96xbf16>, vector<1x96xf32> -> vector<1x96xf32>
    %21 = arith.truncf %14 : vector<1x32xf32> to vector<1x32xbf16>
    %cst_22 = arith.constant dense<0.000000e+00> : vector<1x96xf32>
    %22 = tpu.matmul %21, %6, %cst_22 {dimension_numbers = #tpu.dot_dimension_numbers<[1], [0], [0], [1], [0, 0, 1, 1], [], []>} : vector<1x32xbf16>, vector<32x96xbf16>, vector<1x96xf32> -> vector<1x96xf32>
    %23 = vector.extract_strided_slice %16 {offsets = [0, 0], sizes = [1, 32], strides = [1, 1]} : vector<1x96xf32> to vector<1x32xf32>
    %24 = vector.extract_strided_slice %20 {offsets = [0, 0], sizes = [1, 32], strides = [1, 1]} : vector<1x96xf32> to vector<1x32xf32>
    %25 = arith.addf %23, %24 : vector<1x32xf32>
    %26 = arith.negf %25 : vector<1x32xf32>
    %27 = math.exp %26 : vector<1x32xf32>
    %cst_23 = arith.constant 1.000000e+00 : f32
    %28 = vector.broadcast %cst_23 : f32 to vector<1x32xf32>
    %29 = arith.addf %28, %27 : vector<1x32xf32>
    %30 = arith.divf %28, %29 : vector<1x32xf32>
    %31 = vector.extract_strided_slice %16 {offsets = [0, 32], sizes = [1, 32], strides = [1, 1]} : vector<1x96xf32> to vector<1x32xf32>
    %32 = vector.extract_strided_slice %20 {offsets = [0, 32], sizes = [1, 32], strides = [1, 1]} : vector<1x96xf32> to vector<1x32xf32>
    %33 = arith.addf %31, %32 : vector<1x32xf32>
    %34 = arith.negf %33 : vector<1x32xf32>
    %35 = math.exp %34 : vector<1x32xf32>
    %cst_24 = arith.constant 1.000000e+00 : f32
    %36 = vector.broadcast %cst_24 : f32 to vector<1x32xf32>
    %37 = arith.addf %36, %35 : vector<1x32xf32>
    %38 = arith.divf %36, %37 : vector<1x32xf32>
    %39 = vector.extract_strided_slice %16 {offsets = [0, 64], sizes = [1, 32], strides = [1, 1]} : vector<1x96xf32> to vector<1x32xf32>
    %40 = vector.extract_strided_slice %20 {offsets = [0, 64], sizes = [1, 32], strides = [1, 1]} : vector<1x96xf32> to vector<1x32xf32>
    %41 = arith.addf %40, %8 : vector<1x32xf32>
    %42 = arith.mulf %30, %41 : vector<1x32xf32>
    %43 = arith.addf %39, %42 : vector<1x32xf32>
    %44 = math.tanh %43 : vector<1x32xf32>
    %cst_25 = arith.constant 1.000000e+00 : f32
    %45 = vector.broadcast %cst_25 : f32 to vector<1x32xf32>
    %46 = arith.subf %45, %38 : vector<1x32xf32>
    %47 = arith.mulf %46, %44 : vector<1x32xf32>
    %48 = arith.mulf %38, %12 : vector<1x32xf32>
    %49 = arith.addf %47, %48 : vector<1x32xf32>
    %50 = vector.extract_strided_slice %18 {offsets = [0, 0], sizes = [1, 32], strides = [1, 1]} : vector<1x96xf32> to vector<1x32xf32>
    %51 = vector.extract_strided_slice %22 {offsets = [0, 0], sizes = [1, 32], strides = [1, 1]} : vector<1x96xf32> to vector<1x32xf32>
    %52 = arith.addf %50, %51 : vector<1x32xf32>
    %53 = arith.negf %52 : vector<1x32xf32>
    %54 = math.exp %53 : vector<1x32xf32>
    %cst_26 = arith.constant 1.000000e+00 : f32
    %55 = vector.broadcast %cst_26 : f32 to vector<1x32xf32>
    %56 = arith.addf %55, %54 : vector<1x32xf32>
    %57 = arith.divf %55, %56 : vector<1x32xf32>
    %58 = vector.extract_strided_slice %18 {offsets = [0, 32], sizes = [1, 32], strides = [1, 1]} : vector<1x96xf32> to vector<1x32xf32>
    %59 = vector.extract_strided_slice %22 {offsets = [0, 32], sizes = [1, 32], strides = [1, 1]} : vector<1x96xf32> to vector<1x32xf32>
    %60 = arith.addf %58, %59 : vector<1x32xf32>
    %61 = arith.negf %60 : vector<1x32xf32>
    %62 = math.exp %61 : vector<1x32xf32>
    %cst_27 = arith.constant 1.000000e+00 : f32
    %63 = vector.broadcast %cst_27 : f32 to vector<1x32xf32>
    %64 = arith.addf %63, %62 : vector<1x32xf32>
    %65 = arith.divf %63, %64 : vector<1x32xf32>
    %66 = vector.extract_strided_slice %18 {offsets = [0, 64], sizes = [1, 32], strides = [1, 1]} : vector<1x96xf32> to vector<1x32xf32>
    %67 = vector.extract_strided_slice %22 {offsets = [0, 64], sizes = [1, 32], strides = [1, 1]} : vector<1x96xf32> to vector<1x32xf32>
    %68 = arith.addf %67, %10 : vector<1x32xf32>
    %69 = arith.mulf %57, %68 : vector<1x32xf32>
    %70 = arith.addf %66, %69 : vector<1x32xf32>
    %71 = math.tanh %70 : vector<1x32xf32>
    %cst_28 = arith.constant 1.000000e+00 : f32
    %72 = vector.broadcast %cst_28 : f32 to vector<1x32xf32>
    %73 = arith.subf %72, %65 : vector<1x32xf32>
    %74 = arith.mulf %73, %71 : vector<1x32xf32>
    %75 = arith.mulf %65, %14 : vector<1x32xf32>
    %76 = arith.addf %74, %75 : vector<1x32xf32>
    %c0_29 = arith.constant 0 : index
    %c0_30 = arith.constant 0 : index
    %c0_31 = arith.constant 0 : index
    %77 = vector.load %arg6[%c0_29, %c0_30, %c0_31] : memref<1x8x32xf32, #tpu.memory_space<vmem>>, vector<1x1x32xf32>
    %78 = vector.shape_cast %77 : vector<1x1x32xf32> to vector<1x32xf32>
    %79 = vector.shape_cast %49 : vector<1x32xf32> to vector<1x1x32xf32>
    tpu.vector_store %arg6[%c0_29, %c0_30, %c0_31], %79 {strides = array<i32>} : memref<1x8x32xf32, #tpu.memory_space<vmem>>, vector<1x1x32xf32>,
    %c0_32 = arith.constant 0 : index
    %c7_33 = arith.constant 7 : index
    %c0_34 = arith.constant 0 : index
    %80 = vector.load %arg7[%c0_32, %c7_33, %c0_34] : memref<1x8x32xf32, #tpu.memory_space<vmem>>, vector<1x1x32xf32>
    %81 = vector.shape_cast %80 : vector<1x1x32xf32> to vector<1x32xf32>
    %82 = vector.shape_cast %76 : vector<1x32xf32> to vector<1x1x32xf32>
    tpu.vector_store %arg7[%c0_32, %c7_33, %c0_34], %82 {strides = array<i32>} : memref<1x8x32xf32, #tpu.memory_space<vmem>>, vector<1x1x32xf32>,
    %c0_35 = arith.constant 0 : index
    %c1_36 = arith.constant 1 : index
    %c0_37 = arith.constant 0 : index
    %83 = vector.load %arg2[%c0_35, %c1_36, %c0_37] : memref<1x8x96xf32, #tpu.memory_space<vmem>>, vector<1x1x96xf32>
    %84 = vector.shape_cast %83 : vector<1x1x96xf32> to vector<1x96xf32>
    %c0_38 = arith.constant 0 : index
    %c6 = arith.constant 6 : index
    %c0_39 = arith.constant 0 : index
    %85 = vector.load %arg3[%c0_38, %c6, %c0_39] : memref<1x8x96xf32, #tpu.memory_space<vmem>>, vector<1x1x96xf32>
    %86 = vector.shape_cast %85 : vector<1x1x96xf32> to vector<1x96xf32>
    %87 = arith.truncf %49 : vector<1x32xf32> to vector<1x32xbf16>
    %cst_40 = arith.constant dense<0.000000e+00> : vector<1x96xf32>
    %88 = tpu.matmul %87, %4, %cst_40 {dimension_numbers = #tpu.dot_dimension_numbers<[1], [0], [0], [1], [0, 0, 1, 1], [], []>} : vector<1x32xbf16>, vector<32x96xbf16>, vector<1x96xf32> -> vector<1x96xf32>
    %89 = arith.truncf %76 : vector<1x32xf32> to vector<1x32xbf16>
    %cst_41 = arith.constant dense<0.000000e+00> : vector<1x96xf32>
    %90 = tpu.matmul %89, %6, %cst_41 {dimension_numbers = #tpu.dot_dimension_numbers<[1], [0], [0], [1], [0, 0, 1, 1], [], []>} : vector<1x32xbf16>, vector<32x96xbf16>, vector<1x96xf32> -> vector<1x96xf32>
    %91 = vector.extract_strided_slice %84 {offsets = [0, 0], sizes = [1, 32], strides = [1, 1]} : vector<1x96xf32> to vector<1x32xf32>
    %92 = vector.extract_strided_slice %88 {offsets = [0, 0], sizes = [1, 32], strides = [1, 1]} : vector<1x96xf32> to vector<1x32xf32>
    %93 = arith.addf %91, %92 : vector<1x32xf32>
    %94 = arith.negf %93 : vector<1x32xf32>
    %95 = math.exp %94 : vector<1x32xf32>
    %cst_42 = arith.constant 1.000000e+00 : f32
    %96 = vector.broadcast %cst_42 : f32 to vector<1x32xf32>
    %97 = arith.addf %96, %95 : vector<1x32xf32>
    %98 = arith.divf %96, %97 : vector<1x32xf32>
    %99 = vector.extract_strided_slice %84 {offsets = [0, 32], sizes = [1, 32], strides = [1, 1]} : vector<1x96xf32> to vector<1x32xf32>
    %100 = vector.extract_strided_slice %88 {offsets = [0, 32], sizes = [1, 32], strides = [1, 1]} : vector<1x96xf32> to vector<1x32xf32>
    %101 = arith.addf %99, %100 : vector<1x32xf32>
    %102 = arith.negf %101 : vector<1x32xf32>
    %103 = math.exp %102 : vector<1x32xf32>
    %cst_43 = arith.constant 1.000000e+00 : f32
    %104 = vector.broadcast %cst_43 : f32 to vector<1x32xf32>
    %105 = arith.addf %104, %103 : vector<1x32xf32>
    %106 = arith.divf %104, %105 : vector<1x32xf32>
    %107 = vector.extract_strided_slice %84 {offsets = [0, 64], sizes = [1, 32], strides = [1, 1]} : vector<1x96xf32> to vector<1x32xf32>
    %108 = vector.extract_strided_slice %88 {offsets = [0, 64], sizes = [1, 32], strides = [1, 1]} : vector<1x96xf32> to vector<1x32xf32>
    %109 = arith.addf %108, %8 : vector<1x32xf32>
    %110 = arith.mulf %98, %109 : vector<1x32xf32>
    %111 = arith.addf %107, %110 : vector<1x32xf32>
    %112 = math.tanh %111 : vector<1x32xf32>
    %cst_44 = arith.constant 1.000000e+00 : f32
    %113 = vector.broadcast %cst_44 : f32 to vector<1x32xf32>
    %114 = arith.subf %113, %106 : vector<1x32xf32>
    %115 = arith.mulf %114, %112 : vector<1x32xf32>
    %116 = arith.mulf %106, %49 : vector<1x32xf32>
    %117 = arith.addf %115, %116 : vector<1x32xf32>
    %118 = vector.extract_strided_slice %86 {offsets = [0, 0], sizes = [1, 32], strides = [1, 1]} : vector<1x96xf32> to vector<1x32xf32>
    %119 = vector.extract_strided_slice %90 {offsets = [0, 0], sizes = [1, 32], strides = [1, 1]} : vector<1x96xf32> to vector<1x32xf32>
    %120 = arith.addf %118, %119 : vector<1x32xf32>
    %121 = arith.negf %120 : vector<1x32xf32>
    %122 = math.exp %121 : vector<1x32xf32>
    %cst_45 = arith.constant 1.000000e+00 : f32
    %123 = vector.broadcast %cst_45 : f32 to vector<1x32xf32>
    %124 = arith.addf %123, %122 : vector<1x32xf32>
    %125 = arith.divf %123, %124 : vector<1x32xf32>
    %126 = vector.extract_strided_slice %86 {offsets = [0, 32], sizes = [1, 32], strides = [1, 1]} : vector<1x96xf32> to vector<1x32xf32>
    %127 = vector.extract_strided_slice %90 {offsets = [0, 32], sizes = [1, 32], strides = [1, 1]} : vector<1x96xf32> to vector<1x32xf32>
    %128 = arith.addf %126, %127 : vector<1x32xf32>
    %129 = arith.negf %128 : vector<1x32xf32>
    %130 = math.exp %129 : vector<1x32xf32>
    %cst_46 = arith.constant 1.000000e+00 : f32
    %131 = vector.broadcast %cst_46 : f32 to vector<1x32xf32>
    %132 = arith.addf %131, %130 : vector<1x32xf32>
    %133 = arith.divf %131, %132 : vector<1x32xf32>
    %134 = vector.extract_strided_slice %86 {offsets = [0, 64], sizes = [1, 32], strides = [1, 1]} : vector<1x96xf32> to vector<1x32xf32>
    %135 = vector.extract_strided_slice %90 {offsets = [0, 64], sizes = [1, 32], strides = [1, 1]} : vector<1x96xf32> to vector<1x32xf32>
    %136 = arith.addf %135, %10 : vector<1x32xf32>
    %137 = arith.mulf %125, %136 : vector<1x32xf32>
    %138 = arith.addf %134, %137 : vector<1x32xf32>
    %139 = math.tanh %138 : vector<1x32xf32>
    %cst_47 = arith.constant 1.000000e+00 : f32
    %140 = vector.broadcast %cst_47 : f32 to vector<1x32xf32>
    %141 = arith.subf %140, %133 : vector<1x32xf32>
    %142 = arith.mulf %141, %139 : vector<1x32xf32>
    %143 = arith.mulf %133, %76 : vector<1x32xf32>
    %144 = arith.addf %142, %143 : vector<1x32xf32>
    %c0_48 = arith.constant 0 : index
    %c1_49 = arith.constant 1 : index
    %c0_50 = arith.constant 0 : index
    %145 = vector.load %arg6[%c0_48, %c1_49, %c0_50] : memref<1x8x32xf32, #tpu.memory_space<vmem>>, vector<1x1x32xf32>
    %146 = vector.shape_cast %145 : vector<1x1x32xf32> to vector<1x32xf32>
    %147 = vector.shape_cast %117 : vector<1x32xf32> to vector<1x1x32xf32>
    tpu.vector_store %arg6[%c0_48, %c1_49, %c0_50], %147 {strides = array<i32>} : memref<1x8x32xf32, #tpu.memory_space<vmem>>, vector<1x1x32xf32>,
    %c0_51 = arith.constant 0 : index
    %c6_52 = arith.constant 6 : index
    %c0_53 = arith.constant 0 : index
    %148 = vector.load %arg7[%c0_51, %c6_52, %c0_53] : memref<1x8x32xf32, #tpu.memory_space<vmem>>, vector<1x1x32xf32>
    %149 = vector.shape_cast %148 : vector<1x1x32xf32> to vector<1x32xf32>
    %150 = vector.shape_cast %144 : vector<1x32xf32> to vector<1x1x32xf32>
    tpu.vector_store %arg7[%c0_51, %c6_52, %c0_53], %150 {strides = array<i32>} : memref<1x8x32xf32, #tpu.memory_space<vmem>>, vector<1x1x32xf32>,
    %c0_54 = arith.constant 0 : index
    %c2 = arith.constant 2 : index
    %c0_55 = arith.constant 0 : index
    %151 = vector.load %arg2[%c0_54, %c2, %c0_55] : memref<1x8x96xf32, #tpu.memory_space<vmem>>, vector<1x1x96xf32>
    %152 = vector.shape_cast %151 : vector<1x1x96xf32> to vector<1x96xf32>
    %c0_56 = arith.constant 0 : index
    %c5 = arith.constant 5 : index
    %c0_57 = arith.constant 0 : index
    %153 = vector.load %arg3[%c0_56, %c5, %c0_57] : memref<1x8x96xf32, #tpu.memory_space<vmem>>, vector<1x1x96xf32>
    %154 = vector.shape_cast %153 : vector<1x1x96xf32> to vector<1x96xf32>
    %155 = arith.truncf %117 : vector<1x32xf32> to vector<1x32xbf16>
    %cst_58 = arith.constant dense<0.000000e+00> : vector<1x96xf32>
    %156 = tpu.matmul %155, %4, %cst_58 {dimension_numbers = #tpu.dot_dimension_numbers<[1], [0], [0], [1], [0, 0, 1, 1], [], []>} : vector<1x32xbf16>, vector<32x96xbf16>, vector<1x96xf32> -> vector<1x96xf32>
    %157 = arith.truncf %144 : vector<1x32xf32> to vector<1x32xbf16>
    %cst_59 = arith.constant dense<0.000000e+00> : vector<1x96xf32>
    %158 = tpu.matmul %157, %6, %cst_59 {dimension_numbers = #tpu.dot_dimension_numbers<[1], [0], [0], [1], [0, 0, 1, 1], [], []>} : vector<1x32xbf16>, vector<32x96xbf16>, vector<1x96xf32> -> vector<1x96xf32>
    %159 = vector.extract_strided_slice %152 {offsets = [0, 0], sizes = [1, 32], strides = [1, 1]} : vector<1x96xf32> to vector<1x32xf32>
    %160 = vector.extract_strided_slice %156 {offsets = [0, 0], sizes = [1, 32], strides = [1, 1]} : vector<1x96xf32> to vector<1x32xf32>
    %161 = arith.addf %159, %160 : vector<1x32xf32>
    %162 = arith.negf %161 : vector<1x32xf32>
    %163 = math.exp %162 : vector<1x32xf32>
    %cst_60 = arith.constant 1.000000e+00 : f32
    %164 = vector.broadcast %cst_60 : f32 to vector<1x32xf32>
    %165 = arith.addf %164, %163 : vector<1x32xf32>
    %166 = arith.divf %164, %165 : vector<1x32xf32>
    %167 = vector.extract_strided_slice %152 {offsets = [0, 32], sizes = [1, 32], strides = [1, 1]} : vector<1x96xf32> to vector<1x32xf32>
    %168 = vector.extract_strided_slice %156 {offsets = [0, 32], sizes = [1, 32], strides = [1, 1]} : vector<1x96xf32> to vector<1x32xf32>
    %169 = arith.addf %167, %168 : vector<1x32xf32>
    %170 = arith.negf %169 : vector<1x32xf32>
    %171 = math.exp %170 : vector<1x32xf32>
    %cst_61 = arith.constant 1.000000e+00 : f32
    %172 = vector.broadcast %cst_61 : f32 to vector<1x32xf32>
    %173 = arith.addf %172, %171 : vector<1x32xf32>
    %174 = arith.divf %172, %173 : vector<1x32xf32>
    %175 = vector.extract_strided_slice %152 {offsets = [0, 64], sizes = [1, 32], strides = [1, 1]} : vector<1x96xf32> to vector<1x32xf32>
    %176 = vector.extract_strided_slice %156 {offsets = [0, 64], sizes = [1, 32], strides = [1, 1]} : vector<1x96xf32> to vector<1x32xf32>
    %177 = arith.addf %176, %8 : vector<1x32xf32>
    %178 = arith.mulf %166, %177 : vector<1x32xf32>
    %179 = arith.addf %175, %178 : vector<1x32xf32>
    %180 = math.tanh %179 : vector<1x32xf32>
    %cst_62 = arith.constant 1.000000e+00 : f32
    %181 = vector.broadcast %cst_62 : f32 to vector<1x32xf32>
    %182 = arith.subf %181, %174 : vector<1x32xf32>
    %183 = arith.mulf %182, %180 : vector<1x32xf32>
    %184 = arith.mulf %174, %117 : vector<1x32xf32>
    %185 = arith.addf %183, %184 : vector<1x32xf32>
    %186 = vector.extract_strided_slice %154 {offsets = [0, 0], sizes = [1, 32], strides = [1, 1]} : vector<1x96xf32> to vector<1x32xf32>
    %187 = vector.extract_strided_slice %158 {offsets = [0, 0], sizes = [1, 32], strides = [1, 1]} : vector<1x96xf32> to vector<1x32xf32>
    %188 = arith.addf %186, %187 : vector<1x32xf32>
    %189 = arith.negf %188 : vector<1x32xf32>
    %190 = math.exp %189 : vector<1x32xf32>
    %cst_63 = arith.constant 1.000000e+00 : f32
    %191 = vector.broadcast %cst_63 : f32 to vector<1x32xf32>
    %192 = arith.addf %191, %190 : vector<1x32xf32>
    %193 = arith.divf %191, %192 : vector<1x32xf32>
    %194 = vector.extract_strided_slice %154 {offsets = [0, 32], sizes = [1, 32], strides = [1, 1]} : vector<1x96xf32> to vector<1x32xf32>
    %195 = vector.extract_strided_slice %158 {offsets = [0, 32], sizes = [1, 32], strides = [1, 1]} : vector<1x96xf32> to vector<1x32xf32>
    %196 = arith.addf %194, %195 : vector<1x32xf32>
    %197 = arith.negf %196 : vector<1x32xf32>
    %198 = math.exp %197 : vector<1x32xf32>
    %cst_64 = arith.constant 1.000000e+00 : f32
    %199 = vector.broadcast %cst_64 : f32 to vector<1x32xf32>
    %200 = arith.addf %199, %198 : vector<1x32xf32>
    %201 = arith.divf %199, %200 : vector<1x32xf32>
    %202 = vector.extract_strided_slice %154 {offsets = [0, 64], sizes = [1, 32], strides = [1, 1]} : vector<1x96xf32> to vector<1x32xf32>
    %203 = vector.extract_strided_slice %158 {offsets = [0, 64], sizes = [1, 32], strides = [1, 1]} : vector<1x96xf32> to vector<1x32xf32>
    %204 = arith.addf %203, %10 : vector<1x32xf32>
    %205 = arith.mulf %193, %204 : vector<1x32xf32>
    %206 = arith.addf %202, %205 : vector<1x32xf32>
    %207 = math.tanh %206 : vector<1x32xf32>
    %cst_65 = arith.constant 1.000000e+00 : f32
    %208 = vector.broadcast %cst_65 : f32 to vector<1x32xf32>
    %209 = arith.subf %208, %201 : vector<1x32xf32>
    %210 = arith.mulf %209, %207 : vector<1x32xf32>
    %211 = arith.mulf %201, %144 : vector<1x32xf32>
    %212 = arith.addf %210, %211 : vector<1x32xf32>
    %c0_66 = arith.constant 0 : index
    %c2_67 = arith.constant 2 : index
    %c0_68 = arith.constant 0 : index
    %213 = vector.load %arg6[%c0_66, %c2_67, %c0_68] : memref<1x8x32xf32, #tpu.memory_space<vmem>>, vector<1x1x32xf32>
    %214 = vector.shape_cast %213 : vector<1x1x32xf32> to vector<1x32xf32>
    %215 = vector.shape_cast %185 : vector<1x32xf32> to vector<1x1x32xf32>
    tpu.vector_store %arg6[%c0_66, %c2_67, %c0_68], %215 {strides = array<i32>} : memref<1x8x32xf32, #tpu.memory_space<vmem>>, vector<1x1x32xf32>,
    %c0_69 = arith.constant 0 : index
    %c5_70 = arith.constant 5 : index
    %c0_71 = arith.constant 0 : index
    %216 = vector.load %arg7[%c0_69, %c5_70, %c0_71] : memref<1x8x32xf32, #tpu.memory_space<vmem>>, vector<1x1x32xf32>
    %217 = vector.shape_cast %216 : vector<1x1x32xf32> to vector<1x32xf32>
    %218 = vector.shape_cast %212 : vector<1x32xf32> to vector<1x1x32xf32>
    tpu.vector_store %arg7[%c0_69, %c5_70, %c0_71], %218 {strides = array<i32>} : memref<1x8x32xf32, #tpu.memory_space<vmem>>, vector<1x1x32xf32>,
    %c0_72 = arith.constant 0 : index
    %c3 = arith.constant 3 : index
    %c0_73 = arith.constant 0 : index
    %219 = vector.load %arg2[%c0_72, %c3, %c0_73] : memref<1x8x96xf32, #tpu.memory_space<vmem>>, vector<1x1x96xf32>
    %220 = vector.shape_cast %219 : vector<1x1x96xf32> to vector<1x96xf32>
    %c0_74 = arith.constant 0 : index
    %c4 = arith.constant 4 : index
    %c0_75 = arith.constant 0 : index
    %221 = vector.load %arg3[%c0_74, %c4, %c0_75] : memref<1x8x96xf32, #tpu.memory_space<vmem>>, vector<1x1x96xf32>
    %222 = vector.shape_cast %221 : vector<1x1x96xf32> to vector<1x96xf32>
    %223 = arith.truncf %185 : vector<1x32xf32> to vector<1x32xbf16>
    %cst_76 = arith.constant dense<0.000000e+00> : vector<1x96xf32>
    %224 = tpu.matmul %223, %4, %cst_76 {dimension_numbers = #tpu.dot_dimension_numbers<[1], [0], [0], [1], [0, 0, 1, 1], [], []>} : vector<1x32xbf16>, vector<32x96xbf16>, vector<1x96xf32> -> vector<1x96xf32>
    %225 = arith.truncf %212 : vector<1x32xf32> to vector<1x32xbf16>
    %cst_77 = arith.constant dense<0.000000e+00> : vector<1x96xf32>
    %226 = tpu.matmul %225, %6, %cst_77 {dimension_numbers = #tpu.dot_dimension_numbers<[1], [0], [0], [1], [0, 0, 1, 1], [], []>} : vector<1x32xbf16>, vector<32x96xbf16>, vector<1x96xf32> -> vector<1x96xf32>
    %227 = vector.extract_strided_slice %220 {offsets = [0, 0], sizes = [1, 32], strides = [1, 1]} : vector<1x96xf32> to vector<1x32xf32>
    %228 = vector.extract_strided_slice %224 {offsets = [0, 0], sizes = [1, 32], strides = [1, 1]} : vector<1x96xf32> to vector<1x32xf32>
    %229 = arith.addf %227, %228 : vector<1x32xf32>
    %230 = arith.negf %229 : vector<1x32xf32>
    %231 = math.exp %230 : vector<1x32xf32>
    %cst_78 = arith.constant 1.000000e+00 : f32
    %232 = vector.broadcast %cst_78 : f32 to vector<1x32xf32>
    %233 = arith.addf %232, %231 : vector<1x32xf32>
    %234 = arith.divf %232, %233 : vector<1x32xf32>
    %235 = vector.extract_strided_slice %220 {offsets = [0, 32], sizes = [1, 32], strides = [1, 1]} : vector<1x96xf32> to vector<1x32xf32>
    %236 = vector.extract_strided_slice %224 {offsets = [0, 32], sizes = [1, 32], strides = [1, 1]} : vector<1x96xf32> to vector<1x32xf32>
    %237 = arith.addf %235, %236 : vector<1x32xf32>
    %238 = arith.negf %237 : vector<1x32xf32>
    %239 = math.exp %238 : vector<1x32xf32>
    %cst_79 = arith.constant 1.000000e+00 : f32
    %240 = vector.broadcast %cst_79 : f32 to vector<1x32xf32>
    %241 = arith.addf %240, %239 : vector<1x32xf32>
    %242 = arith.divf %240, %241 : vector<1x32xf32>
    %243 = vector.extract_strided_slice %220 {offsets = [0, 64], sizes = [1, 32], strides = [1, 1]} : vector<1x96xf32> to vector<1x32xf32>
    %244 = vector.extract_strided_slice %224 {offsets = [0, 64], sizes = [1, 32], strides = [1, 1]} : vector<1x96xf32> to vector<1x32xf32>
    %245 = arith.addf %244, %8 : vector<1x32xf32>
    %246 = arith.mulf %234, %245 : vector<1x32xf32>
    %247 = arith.addf %243, %246 : vector<1x32xf32>
    %248 = math.tanh %247 : vector<1x32xf32>
    %cst_80 = arith.constant 1.000000e+00 : f32
    %249 = vector.broadcast %cst_80 : f32 to vector<1x32xf32>
    %250 = arith.subf %249, %242 : vector<1x32xf32>
    %251 = arith.mulf %250, %248 : vector<1x32xf32>
    %252 = arith.mulf %242, %185 : vector<1x32xf32>
    %253 = arith.addf %251, %252 : vector<1x32xf32>
    %254 = vector.extract_strided_slice %222 {offsets = [0, 0], sizes = [1, 32], strides = [1, 1]} : vector<1x96xf32> to vector<1x32xf32>
    %255 = vector.extract_strided_slice %226 {offsets = [0, 0], sizes = [1, 32], strides = [1, 1]} : vector<1x96xf32> to vector<1x32xf32>
    %256 = arith.addf %254, %255 : vector<1x32xf32>
    %257 = arith.negf %256 : vector<1x32xf32>
    %258 = math.exp %257 : vector<1x32xf32>
    %cst_81 = arith.constant 1.000000e+00 : f32
    %259 = vector.broadcast %cst_81 : f32 to vector<1x32xf32>
    %260 = arith.addf %259, %258 : vector<1x32xf32>
    %261 = arith.divf %259, %260 : vector<1x32xf32>
    %262 = vector.extract_strided_slice %222 {offsets = [0, 32], sizes = [1, 32], strides = [1, 1]} : vector<1x96xf32> to vector<1x32xf32>
    %263 = vector.extract_strided_slice %226 {offsets = [0, 32], sizes = [1, 32], strides = [1, 1]} : vector<1x96xf32> to vector<1x32xf32>
    %264 = arith.addf %262, %263 : vector<1x32xf32>
    %265 = arith.negf %264 : vector<1x32xf32>
    %266 = math.exp %265 : vector<1x32xf32>
    %cst_82 = arith.constant 1.000000e+00 : f32
    %267 = vector.broadcast %cst_82 : f32 to vector<1x32xf32>
    %268 = arith.addf %267, %266 : vector<1x32xf32>
    %269 = arith.divf %267, %268 : vector<1x32xf32>
    %270 = vector.extract_strided_slice %222 {offsets = [0, 64], sizes = [1, 32], strides = [1, 1]} : vector<1x96xf32> to vector<1x32xf32>
    %271 = vector.extract_strided_slice %226 {offsets = [0, 64], sizes = [1, 32], strides = [1, 1]} : vector<1x96xf32> to vector<1x32xf32>
    %272 = arith.addf %271, %10 : vector<1x32xf32>
    %273 = arith.mulf %261, %272 : vector<1x32xf32>
    %274 = arith.addf %270, %273 : vector<1x32xf32>
    %275 = math.tanh %274 : vector<1x32xf32>
    %cst_83 = arith.constant 1.000000e+00 : f32
    %276 = vector.broadcast %cst_83 : f32 to vector<1x32xf32>
    %277 = arith.subf %276, %269 : vector<1x32xf32>
    %278 = arith.mulf %277, %275 : vector<1x32xf32>
    %279 = arith.mulf %269, %212 : vector<1x32xf32>
    %280 = arith.addf %278, %279 : vector<1x32xf32>
    %c0_84 = arith.constant 0 : index
    %c3_85 = arith.constant 3 : index
    %c0_86 = arith.constant 0 : index
    %281 = vector.load %arg6[%c0_84, %c3_85, %c0_86] : memref<1x8x32xf32, #tpu.memory_space<vmem>>, vector<1x1x32xf32>
    %282 = vector.shape_cast %281 : vector<1x1x32xf32> to vector<1x32xf32>
    %283 = vector.shape_cast %253 : vector<1x32xf32> to vector<1x1x32xf32>
    tpu.vector_store %arg6[%c0_84, %c3_85, %c0_86], %283 {strides = array<i32>} : memref<1x8x32xf32, #tpu.memory_space<vmem>>, vector<1x1x32xf32>,
    %c0_87 = arith.constant 0 : index
    %c4_88 = arith.constant 4 : index
    %c0_89 = arith.constant 0 : index
    %284 = vector.load %arg7[%c0_87, %c4_88, %c0_89] : memref<1x8x32xf32, #tpu.memory_space<vmem>>, vector<1x1x32xf32>
    %285 = vector.shape_cast %284 : vector<1x1x32xf32> to vector<1x32xf32>
    %286 = vector.shape_cast %280 : vector<1x32xf32> to vector<1x1x32xf32>
    tpu.vector_store %arg7[%c0_87, %c4_88, %c0_89], %286 {strides = array<i32>} : memref<1x8x32xf32, #tpu.memory_space<vmem>>, vector<1x1x32xf32>,
    %c0_90 = arith.constant 0 : index
    %c4_91 = arith.constant 4 : index
    %c0_92 = arith.constant 0 : index
    %287 = vector.load %arg2[%c0_90, %c4_91, %c0_92] : memref<1x8x96xf32, #tpu.memory_space<vmem>>, vector<1x1x96xf32>
    %288 = vector.shape_cast %287 : vector<1x1x96xf32> to vector<1x96xf32>
    %c0_93 = arith.constant 0 : index
    %c3_94 = arith.constant 3 : index
    %c0_95 = arith.constant 0 : index
    %289 = vector.load %arg3[%c0_93, %c3_94, %c0_95] : memref<1x8x96xf32, #tpu.memory_space<vmem>>, vector<1x1x96xf32>
    %290 = vector.shape_cast %289 : vector<1x1x96xf32> to vector<1x96xf32>
    %291 = arith.truncf %253 : vector<1x32xf32> to vector<1x32xbf16>
    %cst_96 = arith.constant dense<0.000000e+00> : vector<1x96xf32>
    %292 = tpu.matmul %291, %4, %cst_96 {dimension_numbers = #tpu.dot_dimension_numbers<[1], [0], [0], [1], [0, 0, 1, 1], [], []>} : vector<1x32xbf16>, vector<32x96xbf16>, vector<1x96xf32> -> vector<1x96xf32>
    %293 = arith.truncf %280 : vector<1x32xf32> to vector<1x32xbf16>
    %cst_97 = arith.constant dense<0.000000e+00> : vector<1x96xf32>
    %294 = tpu.matmul %293, %6, %cst_97 {dimension_numbers = #tpu.dot_dimension_numbers<[1], [0], [0], [1], [0, 0, 1, 1], [], []>} : vector<1x32xbf16>, vector<32x96xbf16>, vector<1x96xf32> -> vector<1x96xf32>
    %295 = vector.extract_strided_slice %288 {offsets = [0, 0], sizes = [1, 32], strides = [1, 1]} : vector<1x96xf32> to vector<1x32xf32>
    %296 = vector.extract_strided_slice %292 {offsets = [0, 0], sizes = [1, 32], strides = [1, 1]} : vector<1x96xf32> to vector<1x32xf32>
    %297 = arith.addf %295, %296 : vector<1x32xf32>
    %298 = arith.negf %297 : vector<1x32xf32>
    %299 = math.exp %298 : vector<1x32xf32>
    %cst_98 = arith.constant 1.000000e+00 : f32
    %300 = vector.broadcast %cst_98 : f32 to vector<1x32xf32>
    %301 = arith.addf %300, %299 : vector<1x32xf32>
    %302 = arith.divf %300, %301 : vector<1x32xf32>
    %303 = vector.extract_strided_slice %288 {offsets = [0, 32], sizes = [1, 32], strides = [1, 1]} : vector<1x96xf32> to vector<1x32xf32>
    %304 = vector.extract_strided_slice %292 {offsets = [0, 32], sizes = [1, 32], strides = [1, 1]} : vector<1x96xf32> to vector<1x32xf32>
    %305 = arith.addf %303, %304 : vector<1x32xf32>
    %306 = arith.negf %305 : vector<1x32xf32>
    %307 = math.exp %306 : vector<1x32xf32>
    %cst_99 = arith.constant 1.000000e+00 : f32
    %308 = vector.broadcast %cst_99 : f32 to vector<1x32xf32>
    %309 = arith.addf %308, %307 : vector<1x32xf32>
    %310 = arith.divf %308, %309 : vector<1x32xf32>
    %311 = vector.extract_strided_slice %288 {offsets = [0, 64], sizes = [1, 32], strides = [1, 1]} : vector<1x96xf32> to vector<1x32xf32>
    %312 = vector.extract_strided_slice %292 {offsets = [0, 64], sizes = [1, 32], strides = [1, 1]} : vector<1x96xf32> to vector<1x32xf32>
    %313 = arith.addf %312, %8 : vector<1x32xf32>
    %314 = arith.mulf %302, %313 : vector<1x32xf32>
    %315 = arith.addf %311, %314 : vector<1x32xf32>
    %316 = math.tanh %315 : vector<1x32xf32>
    %cst_100 = arith.constant 1.000000e+00 : f32
    %317 = vector.broadcast %cst_100 : f32 to vector<1x32xf32>
    %318 = arith.subf %317, %310 : vector<1x32xf32>
    %319 = arith.mulf %318, %316 : vector<1x32xf32>
    %320 = arith.mulf %310, %253 : vector<1x32xf32>
    %321 = arith.addf %319, %320 : vector<1x32xf32>
    %322 = vector.extract_strided_slice %290 {offsets = [0, 0], sizes = [1, 32], strides = [1, 1]} : vector<1x96xf32> to vector<1x32xf32>
    %323 = vector.extract_strided_slice %294 {offsets = [0, 0], sizes = [1, 32], strides = [1, 1]} : vector<1x96xf32> to vector<1x32xf32>
    %324 = arith.addf %322, %323 : vector<1x32xf32>
    %325 = arith.negf %324 : vector<1x32xf32>
    %326 = math.exp %325 : vector<1x32xf32>
    %cst_101 = arith.constant 1.000000e+00 : f32
    %327 = vector.broadcast %cst_101 : f32 to vector<1x32xf32>
    %328 = arith.addf %327, %326 : vector<1x32xf32>
    %329 = arith.divf %327, %328 : vector<1x32xf32>
    %330 = vector.extract_strided_slice %290 {offsets = [0, 32], sizes = [1, 32], strides = [1, 1]} : vector<1x96xf32> to vector<1x32xf32>
    %331 = vector.extract_strided_slice %294 {offsets = [0, 32], sizes = [1, 32], strides = [1, 1]} : vector<1x96xf32> to vector<1x32xf32>
    %332 = arith.addf %330, %331 : vector<1x32xf32>
    %333 = arith.negf %332 : vector<1x32xf32>
    %334 = math.exp %333 : vector<1x32xf32>
    %cst_102 = arith.constant 1.000000e+00 : f32
    %335 = vector.broadcast %cst_102 : f32 to vector<1x32xf32>
    %336 = arith.addf %335, %334 : vector<1x32xf32>
    %337 = arith.divf %335, %336 : vector<1x32xf32>
    %338 = vector.extract_strided_slice %290 {offsets = [0, 64], sizes = [1, 32], strides = [1, 1]} : vector<1x96xf32> to vector<1x32xf32>
    %339 = vector.extract_strided_slice %294 {offsets = [0, 64], sizes = [1, 32], strides = [1, 1]} : vector<1x96xf32> to vector<1x32xf32>
    %340 = arith.addf %339, %10 : vector<1x32xf32>
    %341 = arith.mulf %329, %340 : vector<1x32xf32>
    %342 = arith.addf %338, %341 : vector<1x32xf32>
    %343 = math.tanh %342 : vector<1x32xf32>
    %cst_103 = arith.constant 1.000000e+00 : f32
    %344 = vector.broadcast %cst_103 : f32 to vector<1x32xf32>
    %345 = arith.subf %344, %337 : vector<1x32xf32>
    %346 = arith.mulf %345, %343 : vector<1x32xf32>
    %347 = arith.mulf %337, %280 : vector<1x32xf32>
    %348 = arith.addf %346, %347 : vector<1x32xf32>
    %c0_104 = arith.constant 0 : index
    %c4_105 = arith.constant 4 : index
    %c0_106 = arith.constant 0 : index
    %349 = vector.load %arg6[%c0_104, %c4_105, %c0_106] : memref<1x8x32xf32, #tpu.memory_space<vmem>>, vector<1x1x32xf32>
    %350 = vector.shape_cast %349 : vector<1x1x32xf32> to vector<1x32xf32>
    %351 = vector.shape_cast %321 : vector<1x32xf32> to vector<1x1x32xf32>
    tpu.vector_store %arg6[%c0_104, %c4_105, %c0_106], %351 {strides = array<i32>} : memref<1x8x32xf32, #tpu.memory_space<vmem>>, vector<1x1x32xf32>,
    %c0_107 = arith.constant 0 : index
    %c3_108 = arith.constant 3 : index
    %c0_109 = arith.constant 0 : index
    %352 = vector.load %arg7[%c0_107, %c3_108, %c0_109] : memref<1x8x32xf32, #tpu.memory_space<vmem>>, vector<1x1x32xf32>
    %353 = vector.shape_cast %352 : vector<1x1x32xf32> to vector<1x32xf32>
    %354 = vector.shape_cast %348 : vector<1x32xf32> to vector<1x1x32xf32>
    tpu.vector_store %arg7[%c0_107, %c3_108, %c0_109], %354 {strides = array<i32>} : memref<1x8x32xf32, #tpu.memory_space<vmem>>, vector<1x1x32xf32>,
    %c0_110 = arith.constant 0 : index
    %c5_111 = arith.constant 5 : index
    %c0_112 = arith.constant 0 : index
    %355 = vector.load %arg2[%c0_110, %c5_111, %c0_112] : memref<1x8x96xf32, #tpu.memory_space<vmem>>, vector<1x1x96xf32>
    %356 = vector.shape_cast %355 : vector<1x1x96xf32> to vector<1x96xf32>
    %c0_113 = arith.constant 0 : index
    %c2_114 = arith.constant 2 : index
    %c0_115 = arith.constant 0 : index
    %357 = vector.load %arg3[%c0_113, %c2_114, %c0_115] : memref<1x8x96xf32, #tpu.memory_space<vmem>>, vector<1x1x96xf32>
    %358 = vector.shape_cast %357 : vector<1x1x96xf32> to vector<1x96xf32>
    %359 = arith.truncf %321 : vector<1x32xf32> to vector<1x32xbf16>
    %cst_116 = arith.constant dense<0.000000e+00> : vector<1x96xf32>
    %360 = tpu.matmul %359, %4, %cst_116 {dimension_numbers = #tpu.dot_dimension_numbers<[1], [0], [0], [1], [0, 0, 1, 1], [], []>} : vector<1x32xbf16>, vector<32x96xbf16>, vector<1x96xf32> -> vector<1x96xf32>
    %361 = arith.truncf %348 : vector<1x32xf32> to vector<1x32xbf16>
    %cst_117 = arith.constant dense<0.000000e+00> : vector<1x96xf32>
    %362 = tpu.matmul %361, %6, %cst_117 {dimension_numbers = #tpu.dot_dimension_numbers<[1], [0], [0], [1], [0, 0, 1, 1], [], []>} : vector<1x32xbf16>, vector<32x96xbf16>, vector<1x96xf32> -> vector<1x96xf32>
    %363 = vector.extract_strided_slice %356 {offsets = [0, 0], sizes = [1, 32], strides = [1, 1]} : vector<1x96xf32> to vector<1x32xf32>
    %364 = vector.extract_strided_slice %360 {offsets = [0, 0], sizes = [1, 32], strides = [1, 1]} : vector<1x96xf32> to vector<1x32xf32>
    %365 = arith.addf %363, %364 : vector<1x32xf32>
    %366 = arith.negf %365 : vector<1x32xf32>
    %367 = math.exp %366 : vector<1x32xf32>
    %cst_118 = arith.constant 1.000000e+00 : f32
    %368 = vector.broadcast %cst_118 : f32 to vector<1x32xf32>
    %369 = arith.addf %368, %367 : vector<1x32xf32>
    %370 = arith.divf %368, %369 : vector<1x32xf32>
    %371 = vector.extract_strided_slice %356 {offsets = [0, 32], sizes = [1, 32], strides = [1, 1]} : vector<1x96xf32> to vector<1x32xf32>
    %372 = vector.extract_strided_slice %360 {offsets = [0, 32], sizes = [1, 32], strides = [1, 1]} : vector<1x96xf32> to vector<1x32xf32>
    %373 = arith.addf %371, %372 : vector<1x32xf32>
    %374 = arith.negf %373 : vector<1x32xf32>
    %375 = math.exp %374 : vector<1x32xf32>
    %cst_119 = arith.constant 1.000000e+00 : f32
    %376 = vector.broadcast %cst_119 : f32 to vector<1x32xf32>
    %377 = arith.addf %376, %375 : vector<1x32xf32>
    %378 = arith.divf %376, %377 : vector<1x32xf32>
    %379 = vector.extract_strided_slice %356 {offsets = [0, 64], sizes = [1, 32], strides = [1, 1]} : vector<1x96xf32> to vector<1x32xf32>
    %380 = vector.extract_strided_slice %360 {offsets = [0, 64], sizes = [1, 32], strides = [1, 1]} : vector<1x96xf32> to vector<1x32xf32>
    %381 = arith.addf %380, %8 : vector<1x32xf32>
    %382 = arith.mulf %370, %381 : vector<1x32xf32>
    %383 = arith.addf %379, %382 : vector<1x32xf32>
    %384 = math.tanh %383 : vector<1x32xf32>
    %cst_120 = arith.constant 1.000000e+00 : f32
    %385 = vector.broadcast %cst_120 : f32 to vector<1x32xf32>
    %386 = arith.subf %385, %378 : vector<1x32xf32>
    %387 = arith.mulf %386, %384 : vector<1x32xf32>
    %388 = arith.mulf %378, %321 : vector<1x32xf32>
    %389 = arith.addf %387, %388 : vector<1x32xf32>
    %390 = vector.extract_strided_slice %358 {offsets = [0, 0], sizes = [1, 32], strides = [1, 1]} : vector<1x96xf32> to vector<1x32xf32>
    %391 = vector.extract_strided_slice %362 {offsets = [0, 0], sizes = [1, 32], strides = [1, 1]} : vector<1x96xf32> to vector<1x32xf32>
    %392 = arith.addf %390, %391 : vector<1x32xf32>
    %393 = arith.negf %392 : vector<1x32xf32>
    %394 = math.exp %393 : vector<1x32xf32>
    %cst_121 = arith.constant 1.000000e+00 : f32
    %395 = vector.broadcast %cst_121 : f32 to vector<1x32xf32>
    %396 = arith.addf %395, %394 : vector<1x32xf32>
    %397 = arith.divf %395, %396 : vector<1x32xf32>
    %398 = vector.extract_strided_slice %358 {offsets = [0, 32], sizes = [1, 32], strides = [1, 1]} : vector<1x96xf32> to vector<1x32xf32>
    %399 = vector.extract_strided_slice %362 {offsets = [0, 32], sizes = [1, 32], strides = [1, 1]} : vector<1x96xf32> to vector<1x32xf32>
    %400 = arith.addf %398, %399 : vector<1x32xf32>
    %401 = arith.negf %400 : vector<1x32xf32>
    %402 = math.exp %401 : vector<1x32xf32>
    %cst_122 = arith.constant 1.000000e+00 : f32
    %403 = vector.broadcast %cst_122 : f32 to vector<1x32xf32>
    %404 = arith.addf %403, %402 : vector<1x32xf32>
    %405 = arith.divf %403, %404 : vector<1x32xf32>
    %406 = vector.extract_strided_slice %358 {offsets = [0, 64], sizes = [1, 32], strides = [1, 1]} : vector<1x96xf32> to vector<1x32xf32>
    %407 = vector.extract_strided_slice %362 {offsets = [0, 64], sizes = [1, 32], strides = [1, 1]} : vector<1x96xf32> to vector<1x32xf32>
    %408 = arith.addf %407, %10 : vector<1x32xf32>
    %409 = arith.mulf %397, %408 : vector<1x32xf32>
    %410 = arith.addf %406, %409 : vector<1x32xf32>
    %411 = math.tanh %410 : vector<1x32xf32>
    %cst_123 = arith.constant 1.000000e+00 : f32
    %412 = vector.broadcast %cst_123 : f32 to vector<1x32xf32>
    %413 = arith.subf %412, %405 : vector<1x32xf32>
    %414 = arith.mulf %413, %411 : vector<1x32xf32>
    %415 = arith.mulf %405, %348 : vector<1x32xf32>
    %416 = arith.addf %414, %415 : vector<1x32xf32>
    %c0_124 = arith.constant 0 : index
    %c5_125 = arith.constant 5 : index
    %c0_126 = arith.constant 0 : index
    %417 = vector.load %arg6[%c0_124, %c5_125, %c0_126] : memref<1x8x32xf32, #tpu.memory_space<vmem>>, vector<1x1x32xf32>
    %418 = vector.shape_cast %417 : vector<1x1x32xf32> to vector<1x32xf32>
    %419 = vector.shape_cast %389 : vector<1x32xf32> to vector<1x1x32xf32>
    tpu.vector_store %arg6[%c0_124, %c5_125, %c0_126], %419 {strides = array<i32>} : memref<1x8x32xf32, #tpu.memory_space<vmem>>, vector<1x1x32xf32>,
    %c0_127 = arith.constant 0 : index
    %c2_128 = arith.constant 2 : index
    %c0_129 = arith.constant 0 : index
    %420 = vector.load %arg7[%c0_127, %c2_128, %c0_129] : memref<1x8x32xf32, #tpu.memory_space<vmem>>, vector<1x1x32xf32>
    %421 = vector.shape_cast %420 : vector<1x1x32xf32> to vector<1x32xf32>
    %422 = vector.shape_cast %416 : vector<1x32xf32> to vector<1x1x32xf32>
    tpu.vector_store %arg7[%c0_127, %c2_128, %c0_129], %422 {strides = array<i32>} : memref<1x8x32xf32, #tpu.memory_space<vmem>>, vector<1x1x32xf32>,
    %c0_130 = arith.constant 0 : index
    %c6_131 = arith.constant 6 : index
    %c0_132 = arith.constant 0 : index
    %423 = vector.load %arg2[%c0_130, %c6_131, %c0_132] : memref<1x8x96xf32, #tpu.memory_space<vmem>>, vector<1x1x96xf32>
    %424 = vector.shape_cast %423 : vector<1x1x96xf32> to vector<1x96xf32>
    %c0_133 = arith.constant 0 : index
    %c1_134 = arith.constant 1 : index
    %c0_135 = arith.constant 0 : index
    %425 = vector.load %arg3[%c0_133, %c1_134, %c0_135] : memref<1x8x96xf32, #tpu.memory_space<vmem>>, vector<1x1x96xf32>
    %426 = vector.shape_cast %425 : vector<1x1x96xf32> to vector<1x96xf32>
    %427 = arith.truncf %389 : vector<1x32xf32> to vector<1x32xbf16>
    %cst_136 = arith.constant dense<0.000000e+00> : vector<1x96xf32>
    %428 = tpu.matmul %427, %4, %cst_136 {dimension_numbers = #tpu.dot_dimension_numbers<[1], [0], [0], [1], [0, 0, 1, 1], [], []>} : vector<1x32xbf16>, vector<32x96xbf16>, vector<1x96xf32> -> vector<1x96xf32>
    %429 = arith.truncf %416 : vector<1x32xf32> to vector<1x32xbf16>
    %cst_137 = arith.constant dense<0.000000e+00> : vector<1x96xf32>
    %430 = tpu.matmul %429, %6, %cst_137 {dimension_numbers = #tpu.dot_dimension_numbers<[1], [0], [0], [1], [0, 0, 1, 1], [], []>} : vector<1x32xbf16>, vector<32x96xbf16>, vector<1x96xf32> -> vector<1x96xf32>
    %431 = vector.extract_strided_slice %424 {offsets = [0, 0], sizes = [1, 32], strides = [1, 1]} : vector<1x96xf32> to vector<1x32xf32>
    %432 = vector.extract_strided_slice %428 {offsets = [0, 0], sizes = [1, 32], strides = [1, 1]} : vector<1x96xf32> to vector<1x32xf32>
    %433 = arith.addf %431, %432 : vector<1x32xf32>
    %434 = arith.negf %433 : vector<1x32xf32>
    %435 = math.exp %434 : vector<1x32xf32>
    %cst_138 = arith.constant 1.000000e+00 : f32
    %436 = vector.broadcast %cst_138 : f32 to vector<1x32xf32>
    %437 = arith.addf %436, %435 : vector<1x32xf32>
    %438 = arith.divf %436, %437 : vector<1x32xf32>
    %439 = vector.extract_strided_slice %424 {offsets = [0, 32], sizes = [1, 32], strides = [1, 1]} : vector<1x96xf32> to vector<1x32xf32>
    %440 = vector.extract_strided_slice %428 {offsets = [0, 32], sizes = [1, 32], strides = [1, 1]} : vector<1x96xf32> to vector<1x32xf32>
    %441 = arith.addf %439, %440 : vector<1x32xf32>
    %442 = arith.negf %441 : vector<1x32xf32>
    %443 = math.exp %442 : vector<1x32xf32>
    %cst_139 = arith.constant 1.000000e+00 : f32
    %444 = vector.broadcast %cst_139 : f32 to vector<1x32xf32>
    %445 = arith.addf %444, %443 : vector<1x32xf32>
    %446 = arith.divf %444, %445 : vector<1x32xf32>
    %447 = vector.extract_strided_slice %424 {offsets = [0, 64], sizes = [1, 32], strides = [1, 1]} : vector<1x96xf32> to vector<1x32xf32>
    %448 = vector.extract_strided_slice %428 {offsets = [0, 64], sizes = [1, 32], strides = [1, 1]} : vector<1x96xf32> to vector<1x32xf32>
    %449 = arith.addf %448, %8 : vector<1x32xf32>
    %450 = arith.mulf %438, %449 : vector<1x32xf32>
    %451 = arith.addf %447, %450 : vector<1x32xf32>
    %452 = math.tanh %451 : vector<1x32xf32>
    %cst_140 = arith.constant 1.000000e+00 : f32
    %453 = vector.broadcast %cst_140 : f32 to vector<1x32xf32>
    %454 = arith.subf %453, %446 : vector<1x32xf32>
    %455 = arith.mulf %454, %452 : vector<1x32xf32>
    %456 = arith.mulf %446, %389 : vector<1x32xf32>
    %457 = arith.addf %455, %456 : vector<1x32xf32>
    %458 = vector.extract_strided_slice %426 {offsets = [0, 0], sizes = [1, 32], strides = [1, 1]} : vector<1x96xf32> to vector<1x32xf32>
    %459 = vector.extract_strided_slice %430 {offsets = [0, 0], sizes = [1, 32], strides = [1, 1]} : vector<1x96xf32> to vector<1x32xf32>
    %460 = arith.addf %458, %459 : vector<1x32xf32>
    %461 = arith.negf %460 : vector<1x32xf32>
    %462 = math.exp %461 : vector<1x32xf32>
    %cst_141 = arith.constant 1.000000e+00 : f32
    %463 = vector.broadcast %cst_141 : f32 to vector<1x32xf32>
    %464 = arith.addf %463, %462 : vector<1x32xf32>
    %465 = arith.divf %463, %464 : vector<1x32xf32>
    %466 = vector.extract_strided_slice %426 {offsets = [0, 32], sizes = [1, 32], strides = [1, 1]} : vector<1x96xf32> to vector<1x32xf32>
    %467 = vector.extract_strided_slice %430 {offsets = [0, 32], sizes = [1, 32], strides = [1, 1]} : vector<1x96xf32> to vector<1x32xf32>
    %468 = arith.addf %466, %467 : vector<1x32xf32>
    %469 = arith.negf %468 : vector<1x32xf32>
    %470 = math.exp %469 : vector<1x32xf32>
    %cst_142 = arith.constant 1.000000e+00 : f32
    %471 = vector.broadcast %cst_142 : f32 to vector<1x32xf32>
    %472 = arith.addf %471, %470 : vector<1x32xf32>
    %473 = arith.divf %471, %472 : vector<1x32xf32>
    %474 = vector.extract_strided_slice %426 {offsets = [0, 64], sizes = [1, 32], strides = [1, 1]} : vector<1x96xf32> to vector<1x32xf32>
    %475 = vector.extract_strided_slice %430 {offsets = [0, 64], sizes = [1, 32], strides = [1, 1]} : vector<1x96xf32> to vector<1x32xf32>
    %476 = arith.addf %475, %10 : vector<1x32xf32>
    %477 = arith.mulf %465, %476 : vector<1x32xf32>
    %478 = arith.addf %474, %477 : vector<1x32xf32>
    %479 = math.tanh %478 : vector<1x32xf32>
    %cst_143 = arith.constant 1.000000e+00 : f32
    %480 = vector.broadcast %cst_143 : f32 to vector<1x32xf32>
    %481 = arith.subf %480, %473 : vector<1x32xf32>
    %482 = arith.mulf %481, %479 : vector<1x32xf32>
    %483 = arith.mulf %473, %416 : vector<1x32xf32>
    %484 = arith.addf %482, %483 : vector<1x32xf32>
    %c0_144 = arith.constant 0 : index
    %c6_145 = arith.constant 6 : index
    %c0_146 = arith.constant 0 : index
    %485 = vector.load %arg6[%c0_144, %c6_145, %c0_146] : memref<1x8x32xf32, #tpu.memory_space<vmem>>, vector<1x1x32xf32>
    %486 = vector.shape_cast %485 : vector<1x1x32xf32> to vector<1x32xf32>
    %487 = vector.shape_cast %457 : vector<1x32xf32> to vector<1x1x32xf32>
    tpu.vector_store %arg6[%c0_144, %c6_145, %c0_146], %487 {strides = array<i32>} : memref<1x8x32xf32, #tpu.memory_space<vmem>>, vector<1x1x32xf32>,
    %c0_147 = arith.constant 0 : index
    %c1_148 = arith.constant 1 : index
    %c0_149 = arith.constant 0 : index
    %488 = vector.load %arg7[%c0_147, %c1_148, %c0_149] : memref<1x8x32xf32, #tpu.memory_space<vmem>>, vector<1x1x32xf32>
    %489 = vector.shape_cast %488 : vector<1x1x32xf32> to vector<1x32xf32>
    %490 = vector.shape_cast %484 : vector<1x32xf32> to vector<1x1x32xf32>
    tpu.vector_store %arg7[%c0_147, %c1_148, %c0_149], %490 {strides = array<i32>} : memref<1x8x32xf32, #tpu.memory_space<vmem>>, vector<1x1x32xf32>,
    %c0_150 = arith.constant 0 : index
    %c7_151 = arith.constant 7 : index
    %c0_152 = arith.constant 0 : index
    %491 = vector.load %arg2[%c0_150, %c7_151, %c0_152] : memref<1x8x96xf32, #tpu.memory_space<vmem>>, vector<1x1x96xf32>
    %492 = vector.shape_cast %491 : vector<1x1x96xf32> to vector<1x96xf32>
    %c0_153 = arith.constant 0 : index
    %c0_154 = arith.constant 0 : index
    %c0_155 = arith.constant 0 : index
    %493 = vector.load %arg3[%c0_153, %c0_154, %c0_155] : memref<1x8x96xf32, #tpu.memory_space<vmem>>, vector<1x1x96xf32>
    %494 = vector.shape_cast %493 : vector<1x1x96xf32> to vector<1x96xf32>
    %495 = arith.truncf %457 : vector<1x32xf32> to vector<1x32xbf16>
    %cst_156 = arith.constant dense<0.000000e+00> : vector<1x96xf32>
    %496 = tpu.matmul %495, %4, %cst_156 {dimension_numbers = #tpu.dot_dimension_numbers<[1], [0], [0], [1], [0, 0, 1, 1], [], []>} : vector<1x32xbf16>, vector<32x96xbf16>, vector<1x96xf32> -> vector<1x96xf32>
    %497 = arith.truncf %484 : vector<1x32xf32> to vector<1x32xbf16>
    %cst_157 = arith.constant dense<0.000000e+00> : vector<1x96xf32>
    %498 = tpu.matmul %497, %6, %cst_157 {dimension_numbers = #tpu.dot_dimension_numbers<[1], [0], [0], [1], [0, 0, 1, 1], [], []>} : vector<1x32xbf16>, vector<32x96xbf16>, vector<1x96xf32> -> vector<1x96xf32>
    %499 = vector.extract_strided_slice %492 {offsets = [0, 0], sizes = [1, 32], strides = [1, 1]} : vector<1x96xf32> to vector<1x32xf32>
    %500 = vector.extract_strided_slice %496 {offsets = [0, 0], sizes = [1, 32], strides = [1, 1]} : vector<1x96xf32> to vector<1x32xf32>
    %501 = arith.addf %499, %500 : vector<1x32xf32>
    %502 = arith.negf %501 : vector<1x32xf32>
    %503 = math.exp %502 : vector<1x32xf32>
    %cst_158 = arith.constant 1.000000e+00 : f32
    %504 = vector.broadcast %cst_158 : f32 to vector<1x32xf32>
    %505 = arith.addf %504, %503 : vector<1x32xf32>
    %506 = arith.divf %504, %505 : vector<1x32xf32>
    %507 = vector.extract_strided_slice %492 {offsets = [0, 32], sizes = [1, 32], strides = [1, 1]} : vector<1x96xf32> to vector<1x32xf32>
    %508 = vector.extract_strided_slice %496 {offsets = [0, 32], sizes = [1, 32], strides = [1, 1]} : vector<1x96xf32> to vector<1x32xf32>
    %509 = arith.addf %507, %508 : vector<1x32xf32>
    %510 = arith.negf %509 : vector<1x32xf32>
    %511 = math.exp %510 : vector<1x32xf32>
    %cst_159 = arith.constant 1.000000e+00 : f32
    %512 = vector.broadcast %cst_159 : f32 to vector<1x32xf32>
    %513 = arith.addf %512, %511 : vector<1x32xf32>
    %514 = arith.divf %512, %513 : vector<1x32xf32>
    %515 = vector.extract_strided_slice %492 {offsets = [0, 64], sizes = [1, 32], strides = [1, 1]} : vector<1x96xf32> to vector<1x32xf32>
    %516 = vector.extract_strided_slice %496 {offsets = [0, 64], sizes = [1, 32], strides = [1, 1]} : vector<1x96xf32> to vector<1x32xf32>
    %517 = arith.addf %516, %8 : vector<1x32xf32>
    %518 = arith.mulf %506, %517 : vector<1x32xf32>
    %519 = arith.addf %515, %518 : vector<1x32xf32>
    %520 = math.tanh %519 : vector<1x32xf32>
    %cst_160 = arith.constant 1.000000e+00 : f32
    %521 = vector.broadcast %cst_160 : f32 to vector<1x32xf32>
    %522 = arith.subf %521, %514 : vector<1x32xf32>
    %523 = arith.mulf %522, %520 : vector<1x32xf32>
    %524 = arith.mulf %514, %457 : vector<1x32xf32>
    %525 = arith.addf %523, %524 : vector<1x32xf32>
    %526 = vector.extract_strided_slice %494 {offsets = [0, 0], sizes = [1, 32], strides = [1, 1]} : vector<1x96xf32> to vector<1x32xf32>
    %527 = vector.extract_strided_slice %498 {offsets = [0, 0], sizes = [1, 32], strides = [1, 1]} : vector<1x96xf32> to vector<1x32xf32>
    %528 = arith.addf %526, %527 : vector<1x32xf32>
    %529 = arith.negf %528 : vector<1x32xf32>
    %530 = math.exp %529 : vector<1x32xf32>
    %cst_161 = arith.constant 1.000000e+00 : f32
    %531 = vector.broadcast %cst_161 : f32 to vector<1x32xf32>
    %532 = arith.addf %531, %530 : vector<1x32xf32>
    %533 = arith.divf %531, %532 : vector<1x32xf32>
    %534 = vector.extract_strided_slice %494 {offsets = [0, 32], sizes = [1, 32], strides = [1, 1]} : vector<1x96xf32> to vector<1x32xf32>
    %535 = vector.extract_strided_slice %498 {offsets = [0, 32], sizes = [1, 32], strides = [1, 1]} : vector<1x96xf32> to vector<1x32xf32>
    %536 = arith.addf %534, %535 : vector<1x32xf32>
    %537 = arith.negf %536 : vector<1x32xf32>
    %538 = math.exp %537 : vector<1x32xf32>
    %cst_162 = arith.constant 1.000000e+00 : f32
    %539 = vector.broadcast %cst_162 : f32 to vector<1x32xf32>
    %540 = arith.addf %539, %538 : vector<1x32xf32>
    %541 = arith.divf %539, %540 : vector<1x32xf32>
    %542 = vector.extract_strided_slice %494 {offsets = [0, 64], sizes = [1, 32], strides = [1, 1]} : vector<1x96xf32> to vector<1x32xf32>
    %543 = vector.extract_strided_slice %498 {offsets = [0, 64], sizes = [1, 32], strides = [1, 1]} : vector<1x96xf32> to vector<1x32xf32>
    %544 = arith.addf %543, %10 : vector<1x32xf32>
    %545 = arith.mulf %533, %544 : vector<1x32xf32>
    %546 = arith.addf %542, %545 : vector<1x32xf32>
    %547 = math.tanh %546 : vector<1x32xf32>
    %cst_163 = arith.constant 1.000000e+00 : f32
    %548 = vector.broadcast %cst_163 : f32 to vector<1x32xf32>
    %549 = arith.subf %548, %541 : vector<1x32xf32>
    %550 = arith.mulf %549, %547 : vector<1x32xf32>
    %551 = arith.mulf %541, %484 : vector<1x32xf32>
    %552 = arith.addf %550, %551 : vector<1x32xf32>
    %c0_164 = arith.constant 0 : index
    %c7_165 = arith.constant 7 : index
    %c0_166 = arith.constant 0 : index
    %553 = vector.load %arg6[%c0_164, %c7_165, %c0_166] : memref<1x8x32xf32, #tpu.memory_space<vmem>>, vector<1x1x32xf32>
    %554 = vector.shape_cast %553 : vector<1x1x32xf32> to vector<1x32xf32>
    %555 = vector.shape_cast %525 : vector<1x32xf32> to vector<1x1x32xf32>
    tpu.vector_store %arg6[%c0_164, %c7_165, %c0_166], %555 {strides = array<i32>} : memref<1x8x32xf32, #tpu.memory_space<vmem>>, vector<1x1x32xf32>,
    %c0_167 = arith.constant 0 : index
    %c0_168 = arith.constant 0 : index
    %c0_169 = arith.constant 0 : index
    %556 = vector.load %arg7[%c0_167, %c0_168, %c0_169] : memref<1x8x32xf32, #tpu.memory_space<vmem>>, vector<1x1x32xf32>
    %557 = vector.shape_cast %556 : vector<1x1x32xf32> to vector<1x32xf32>
    %558 = vector.shape_cast %552 : vector<1x32xf32> to vector<1x1x32xf32>
    tpu.vector_store %arg7[%c0_167, %c0_168, %c0_169], %558 {strides = array<i32>} : memref<1x8x32xf32, #tpu.memory_space<vmem>>, vector<1x1x32xf32>,
    %c0_170 = arith.constant 0 : index
    %c0_171 = arith.constant 0 : index
    %c0_172 = arith.constant 0 : index
    %559 = vector.load %arg8[%c0_170, %c0_171, %c0_172] : memref<2x1x32xf32, #tpu.memory_space<vmem>>, vector<1x1x32xf32>
    %560 = vector.shape_cast %559 : vector<1x1x32xf32> to vector<1x32xf32>
    %561 = vector.shape_cast %525 : vector<1x32xf32> to vector<1x1x32xf32>
    tpu.vector_store %arg8[%c0_170, %c0_171, %c0_172], %561 {strides = array<i32>} : memref<2x1x32xf32, #tpu.memory_space<vmem>>, vector<1x1x32xf32>,
    %c1_173 = arith.constant 1 : index
    %c0_174 = arith.constant 0 : index
    %c0_175 = arith.constant 0 : index
    %562 = vector.load %arg8[%c1_173, %c0_174, %c0_175] : memref<2x1x32xf32, #tpu.memory_space<vmem>>, vector<1x1x32xf32>
    %563 = vector.shape_cast %562 : vector<1x1x32xf32> to vector<1x32xf32>
    %564 = vector.shape_cast %552 : vector<1x32xf32> to vector<1x1x32xf32>
    tpu.vector_store %arg8[%c1_173, %c0_174, %c0_175], %564 {strides = array<i32>} : memref<2x1x32xf32, #tpu.memory_space<vmem>>, vector<1x1x32xf32>,
    return
  }
  func.func @transform_0(%arg0: i32, %arg1: i32) -> (i32, i32, i32) {
    %c0_i32 = arith.constant 0 : i32
    %c0_i32_0 = arith.constant 0 : i32
    return %arg0, %arg1, %c0_i32 : i32, i32, i32
  }
  func.func @transform_1(%arg0: i32, %arg1: i32) -> (i32, i32, i32) {
    %c1_i32 = arith.constant 1 : i32
    %0 = arith.subi %c1_i32, %arg1 : i32
    %c0_i32 = arith.constant 0 : i32
    %c0_i32_0 = arith.constant 0 : i32
    return %arg0, %0, %c0_i32 : i32, i32, i32
  }
  func.func @transform_2(%arg0: i32, %arg1: i32) -> (i32, i32, i32) {
    %c0_i32 = arith.constant 0 : i32
    %c0_i32_0 = arith.constant 0 : i32
    %c0_i32_1 = arith.constant 0 : i32
    %c0_i32_2 = arith.constant 0 : i32
    return %c0_i32, %c0_i32_0, %c0_i32_1 : i32, i32, i32
  }
  func.func @transform_3(%arg0: i32, %arg1: i32) -> (i32, i32, i32) {
    %c0_i32 = arith.constant 0 : i32
    %c0_i32_0 = arith.constant 0 : i32
    %c0_i32_1 = arith.constant 0 : i32
    %c0_i32_2 = arith.constant 0 : i32
    return %c0_i32, %c0_i32_0, %c0_i32_1 : i32, i32, i32
  }
  func.func @transform_4(%arg0: i32, %arg1: i32) -> (i32, i32, i32) {
    %c0_i32 = arith.constant 0 : i32
    %c0_i32_0 = arith.constant 0 : i32
    return %arg0, %arg1, %c0_i32 : i32, i32, i32
  }
  func.func @transform_5(%arg0: i32, %arg1: i32) -> (i32, i32, i32) {
    %c1_i32 = arith.constant 1 : i32
    %0 = arith.subi %c1_i32, %arg1 : i32
    %c0_i32 = arith.constant 0 : i32
    %c0_i32_0 = arith.constant 0 : i32
    return %arg0, %0, %c0_i32 : i32, i32, i32
  }
}

</mosaic_0001>

<bundles_post_ra>
// kernel: word_lstm_forward.1
= control target key start
LH: loop header
LB: loop body
LE: loop exit
PB: predicated region body
PF: predicated region fallthrough
CT: control target
= control target key end

     0   :  { %s2289_s18 = smov 0   ;;  %s2291_s19 = smov 0   ;;  %s2742_s0 = inlined_call_operand.vmem [shape: f32[2,16,96], index: 0, kind: input, shape index: {}]   ;;  %s2743_s1 = inlined_call_operand.vmem [shape: f32[2,16,96], index: 1, kind: input, shape index: {}]   ;;  %s2744_s2 = inlined_call_operand.vmem [shape: bf16[2,32,96], index: 2, kind: input, shape index: {}]   ;;  %s2745_s3 = inlined_call_operand.vmem [shape: f32[2,1,32], index: 3, kind: input, shape index: {}]   ;;  %s2746_s4 = inlined_call_operand.vmem [shape: f32[2,16,32], index: 4, kind: output, shape index: {0}]   ;;  %s2747_s5 = inlined_call_operand.vmem [shape: f32[2,16,32], index: 5, kind: output, shape index: {1}]  }
   0x1   :  { %s2293_s20 = smov 0   ;;  %s2295_s21 = smov 0  }
   0x2   :  { %s2297_s22 = smov 0  }
   0x3 LB: > { %s25_s23 = sadd.s32 1, %s2243_s20  ;;  %s28_s24 = sadd.s32 1, %s2247_s21  ;;  %s2251_s22 = sphi %s2297_s22, %s16_s22   ;;  %s2247_s21 = sphi %s2295_s21, %s2751_s21   ;;  %s2243_s20 = sphi %s2293_s20, %s2750_s20   ;;  %s2239_s19 = sphi %s2291_s19, %s2749_s19   ;;  %s2235_s18 = sphi %s2289_s18, %s2748_s18  }
   0x4   : > { %p26_p0 = scmp.ge.s32.totalorder %s25_s23, 2  ;;  %p1836_p1 = scmp.ge.s32.totalorder %s2251_s22, 1 }
   0x5   : > { %p232_p2 = scmp.lt.s32.totalorder %s2251_s22, 5 }
   0x6   : > { %s2753_s23 = smov (%p26_p0, %s25_s23), 0  ;;  %s2755_s24 = smov (!%p26_p0, %s28_s24), %s2247_s21 }
   0x7   : > { %p233_p3 = pnand %p1836_p1, %p232_p2  ;;  %p30_p4 = scmp.ge.s32.totalorder %s2755_s24, 2 }
   0x8   : > { %p284_p5 = scmp.lt.s32.totalorder (!%p233_p3), %s2239_s19, 1  ;;  %p286_p6 = scmp.lt.s32.totalorder (!%p233_p3), %s2235_s18, 1 }
   0x9   : > { %s2757_s24 = smov (%p30_p4, %s2755_s24), 0  ;;  %236 = sbr.rel (%p233_p3) target bundleno = 5597 (0x15dd), region = 36 }
   0xa   : > { %s292_s25 = ssub.s32 (!%p233_p3), 1, %s2235_s18  ;;  %p1845_p8 = scmp.ne.s32.totalorder (!%p233_p3), %s2235_s18, 0 }
   0xb   : > { %p295_p7 = scmp.lt.s32.totalorder (!%p233_p3), %s292_s25, 1 }
  0x10   : > { %s2759_s19 = smov (!%p284_p5, %s2239_s19), 1  ;;  %s2761_s25 = smov (!%p295_p7, %s292_s25), 1 }
  0x11   : > { %s287_s26 = scalar_select %p286_p6, %s2235_s18, 1 }
  0x12   : > { %s1837_s27 = sshll.u32 %s2759_s19, 1  ;;  %324 = sbr.rel (%p1845_p8) target bundleno = 25 (0x19), region = 40  ;;  %vm325_vm0 = vcmask (!%p1845_p8), 253952   ;;  %v2253_v0 = vmov (!%p1845_p8), 0.0  }
  0x13   : > { %s289_s28 = sadd.s32 %s1837_s27, %s287_s26  ;;  %s298_s11 = sadd.s32 %s1837_s27, %s2761_s25  ;;  %326 = vst.msk [vmem:[#allocation2] sm:$0x1] (!%p1845_p8), %vm325_vm0, %v2253_v0  ;;  %327 = vst.msk [vmem:[#allocation2 + $0x1] sm:$0x1] (!%p1845_p8), %vm325_vm0, %v2253_v0 }
  0x14   : > { %s1838_s29 = sshll.u32 %s289_s28, 3  ;;  %s1840_s12 = sshll.u32 %s298_s11, 3 }
  0x15   : > { %s2327_s7 = scalar_lea.vmem %s2742_s0, %s1838_s29  ;;  %s2332_s10 = scalar_lea.vmem %s2746_s4, %s1838_s29 }
  0x16   : > { %s2337_s15 = scalar_lea.vmem %s2743_s1, %s1840_s12  ;;  %s2342_s19 = scalar_lea.vmem %s2747_s5, %s1840_s12 }
  0x19 PF: > { %v2348_v1 = vld [vmem:[%s2744_s2] sm:$0xff]   ;;  %v2254_v2 = vmov 0.0   ;;  %v2355_v3 = vld [vmem:[%s2744_s2 + $0x10] sm:$0xff]   ;;  %v2361_v4 = vld [vmem:[%s2744_s2 + $0x8] sm:$0xff]   ;;  %vm2255_vm1 = vmmov 0   ;;  %s2256_s11 = smov 64   ;;  %v492_v34 = vlaneseq }
  0x1a   : > { %1939 = vmatprep.subr.bf16.mxu0 %v2254_v2  ;;  %1947 = vmatprep.subr.bf16.mxu1 %v2254_v2  ;;  %v2370_v5 = vld [vmem:[%s2744_s2 + $0x18] sm:$0xff]   ;;  %v2373_v6 = vld [vmem:[#allocation2] sm:$0x1]  ;;  %v2377_v7 = vld [vmem:[#allocation2 + $0x1] sm:$0x1]  ;;  %vm358_vm2 = vcmask 261120  }
  0x1b   : > { %1940 = vmatpush3.bf16.msra.mxu0 %v2348_v1  ;;  %1943 = vmatprep.mubr.msk.bf16.mxu0 %vm2255_vm1, %v2254_v2  ;;  %v1858_v8 = vld [vmem:[%s2745_s3] ss:$0 sm:$0xff]  ;;  %v345_v9 = vpack.c.bf16 %v2373_v6, %v2373_v6  ;;  %v402_v10 = vpack.c.bf16 %v2377_v7, %v2377_v7  ;;  %v1860_v11 = vld [vmem:[%s2745_s3 + $0x1] ss:$0 sm:$0xff]  ;;  %v344_v26 = vld [vmem:[%s2337_s15 + $0x7] sm:$0x1] }
  0x1c   : > { %1948 = vmatpush3.bf16.msra.mxu1 %v2355_v3  ;;  %1941 = vmatprep.subr.bf16.mxu0 %v2254_v2  ;;  %v343_v24 = vld [vmem:[%s2327_s7] sm:$0x1]  ;;  %v493_v35 = vshrl.u32 %v492_v34, 7  ;;  %s2257_s14 = smov 32   ;;  %s2258_s16 = smov 96   ;;  %vm548_vm3 = vcmask 253952  }
  0x1d   : > { %1949 = vmatprep.subr.bf16.mxu1 %v2254_v2  ;;  %1951 = vmatprep.mubr.msk.bf16.mxu1 %vm2255_vm1, %v2254_v2 }
  0x1e   : > { %470 = vrot.lane.b32.xlu0 %v1858_v8, %s2256_s11  ;;  %v494_v39 = vsub.s32 0, %v493_v35 }
  0x1f   : > { %1942 = vmatpush3.bf16.msra.mxu0 %v2361_v4 }
  0x20   : > { %1950 = vmatpush3.bf16.msra.mxu1 %v2370_v5  ;;  %1955 = vmatprep.subr.bf16.mxu0 %v2254_v2  ;;  %v495_v43 = vrot.slane %v2373_v6, %v494_v39  ;;  %v538_v44 = vrot.slane %v2377_v7, %v494_v39 }
  0x21   : > { %1963 = vmatprep.subr.bf16.mxu1 %v2254_v2 }
  0x22   : > { %1944 = vmatmul.mubr.msk.bf16.vlgmr.msra.gmra.mrb[0].mxu0 %vm358_vm2, %v345_v9  ;;  %513 = vrot.lane.b32.xlu0 %v1860_v11, %s2256_s11 }
  0x23   : > { %1952 = vmatmul.mubr.msk.bf16.vlgmr.msra.gmra.mrb[0].mxu1 %vm358_vm2, %v402_v10  ;;  %1956 = vmatpush3.bf16.msra.mxu0 %v2348_v1 }
  0x24   : > { %1957 = vmatprep.subr.bf16.mxu0 %v2254_v2  ;;  %1964 = vmatpush3.bf16.msra.mxu1 %v2355_v3 }
  0x25   : > { %1959 = vmatprep.mubr.msk.bf16.mxu0 %vm2255_vm1, %v2254_v2  ;;  %1965 = vmatprep.subr.bf16.mxu1 %v2254_v2 }
  0x26   : > { %1967 = vmatprep.mubr.msk.bf16.mxu1 %vm2255_vm1, %v2254_v2 }
  0x27   : > { %1958 = vmatpush3.bf16.msra.mxu0 %v2361_v4 }
  0x28   : > { %1966 = vmatpush3.bf16.msra.mxu1 %v2370_v5  ;;  %1971 = vmatprep.subr.bf16.mxu0 %v2254_v2 }
  0x29   : > { %1979 = vmatprep.subr.bf16.mxu1 %v2254_v2 }
  0x90   : > { %v2409_v12 = vpop.permute.xlu0 %470 }
  0x94   : > { %v2411_v14 = vpop.permute.xlu0 %513 }
  0xf5   : > { %v396_v13 = vpop.f32.mrb[0].mxu0 }
  0xf6   : > { %v1945_v15 = vpop.f32.mrb[1].mxu0  ;;  %v452_v16 = vpop.f32.mrb[0].mxu1  ;;  %v473_v17 = vadd.f32 %v2409_v12, %v396_v13  ;;  %v458_v25 = vadd.f32 %v396_v13, %v343_v24 }
  0xf7   : > { %v399_v18 = vpop.f32.mrb[2].mxu0  ;;  %v1953_v19 = vpop.f32.mrb[1].mxu1  ;;  %v516_v22 = vadd.f32 %v2411_v14, %v452_v16  ;;  %v501_v28 = vadd.f32 %v452_v16, %v344_v26 }
  0xf8   : > { %v455_v20 = vpop.f32.mrb[2].mxu1  ;;  %475 = vrot.lane.b32.xlu1 %v473_v17, %s2256_s11  ;;  %v1946_v21 = vpop.f32.mrb[3].mxu0  ;;  %v1857_v27 = vmul.f32 -1.442695, %v458_v25 }
  0xf9   : > { %v1954_v23 = vpop.f32.mrb[3].mxu1  ;;  %v1859_v29 = vmul.f32 -1.442695, %v501_v28  ;;  %v555_v20 = vld [vmem:[%s2327_s7 + $0x1] sm:$0x1] }
  0xfa   : > { %2117 = vpow2.f32 %v1857_v27 }
  0xfb   : > { %2119 = vpow2.f32 %v1859_v29 }
  0xfc   : > { %518 = vrot.lane.b32.xlu1 %v516_v22, %s2256_s11  ;;  %v556_v22 = vld [vmem:[%s2337_s15 + $0x6] sm:$0x1] }
 0x104   : > { %v2118_v30 = vpop.eup %2117 }
 0x105   : > { %v462_v31 = vadd.f32 1.0, %v2118_v30  ;;  %v2120_v32 = vpop.eup %2119 }
 0x106   : > { %v505_v33 = vadd.f32 1.0, %v2120_v32 }
 0x107   : > { %2121 = vrcp.f32 %v462_v31 }
 0x108   : > { %2123 = vrcp.f32 %v505_v33 }
 0x111   : > { %v2122_v36 = vpop.eup %2121 }
 0x112   : > { %v2124_v40 = vpop.eup %2123  ;;  %v485_v52 = vsub.f32 1.0, %v2122_v36 }
 0x113   : > { %v528_v58 = vsub.f32 1.0, %v2124_v40 }
 0x16a   : > { %v476_v37 = vpop.permute.xlu1 %475 }
 0x16b   : > { %v478_v38 = vmul.f32 %v2122_v36, %v476_v37 }
 0x16d   : > { %480 = vrot.lane.b32.xlu0 %v478_v38, %s2256_s11 }
 0x16e   : > { %v519_v41 = vpop.permute.xlu1 %518 }
 0x16f   : > { %v521_v42 = vmul.f32 %v2124_v40, %v519_v41 }
 0x171   : > { %523 = vrot.lane.b32.xlu1 %v521_v42, %s2256_s11 }
 0x175   : > { %496 = vrot.lane.b32.xlu1 %v495_v43, %s2257_s14 }
 0x179   : > { %539 = vrot.lane.b32.xlu1 %v538_v44, %s2257_s14 }
 0x1df   : > { %v481_v45 = vpop.permute.xlu0 %480 }
 0x1e0   : > { %v483_v46 = vadd.f32 %v481_v45, %v343_v24 }
 0x1e2   : > { %2125 = vtanh.f32 %v483_v46 }
 0x1e3   : > { %v524_v47 = vpop.permute.xlu1 %523 }
 0x1e4   : > { %v526_v48 = vadd.f32 %v524_v47, %v344_v26 }
 0x1e6   : > { %2127 = vtanh.f32 %v526_v48 }
 0x1e7   : > { %v497_v51 = vpop.permute.xlu1 %496 }
 0x1e8   : > { %v499_v54 = vmul.f32 %v2122_v36, %v497_v51 }
 0x1eb   : > { %v540_v56 = vpop.permute.xlu1 %539 }
 0x1ec   : > { %v2126_v49 = vpop.eup %2125  ;;  %v542_v60 = vmul.f32 %v2124_v40, %v540_v56 }
 0x1ed   : > { %487 = vrot.lane.b32.xlu0 %v2126_v49, %s2258_s16 }
 0x1f0   : > { %v2128_v50 = vpop.eup %2127 }
 0x1f1   : > { %530 = vrot.lane.b32.xlu0 %v2128_v50, %s2258_s16 }
 0x25f   : > { %v488_v53 = vpop.permute.xlu0 %487 }
 0x260   : > { %v490_v55 = vmul.f32 %v488_v53, %v485_v52 }
 0x262   : > { %v2425_v57 = vadd.f32 %v499_v54, %v490_v55 }
 0x263   : > { %v531_v59 = vpop.permute.xlu0 %530 }
 0x264   : > { %v533_v61 = vmul.f32 %v531_v59, %v528_v58  ;;  %v557_v62 = vpack.c.bf16 %v2425_v57, %v2425_v57 }
 0x266   : > { %v2429_v63 = vadd.f32 %v542_v60, %v533_v61  ;;  %559 = vrot.lane.b32.xlu0 %v557_v62, %s2258_s16 }
 0x268   : > { %v604_v0 = vpack.c.bf16 %v2429_v63, %v2429_v63 }
 0x26a   : > { %606 = vrot.lane.b32.xlu1 %v604_v0, %s2258_s16 }
 0x2d8   : > { %v560_v6 = vpop.permute.xlu0 %559 }
 0x2d9   : > { %1960 = vmatmul.mubr.msk.bf16.vlgmr.msra.gmra.mrb[4].mxu0 %vm358_vm2, %v560_v6 }
 0x2da   : > { %1972 = vmatpush3.bf16.msra.mxu0 %v2348_v1  ;;  %1975 = vmatprep.mubr.msk.bf16.mxu0 %vm2255_vm1, %v2254_v2 }
 0x2db   : > { %1973 = vmatprep.subr.bf16.mxu0 %v2254_v2 }
 0x2dc   : > { %v607_v7 = vpop.permute.xlu1 %606 }
 0x2dd   : > { %1968 = vmatmul.mubr.msk.bf16.vlgmr.msra.gmra.mrb[4].mxu1 %vm358_vm2, %v607_v7 }
 0x2de   : > { %1980 = vmatpush3.bf16.msra.mxu1 %v2355_v3  ;;  %1974 = vmatpush3.bf16.msra.mxu0 %v2361_v4 }
 0x2df   : > { %1981 = vmatprep.subr.bf16.mxu1 %v2254_v2  ;;  %1983 = vmatprep.mubr.msk.bf16.mxu1 %vm2255_vm1, %v2254_v2 }
 0x2e0   : > { %1987 = vmatprep.subr.bf16.mxu0 %v2254_v2 }
 0x2e2   : > { %1982 = vmatpush3.bf16.msra.mxu1 %v2370_v5 }
 0x2e3   : > { %1995 = vmatprep.subr.bf16.mxu1 %v2254_v2 }
 0x3ac   : > { %v598_v8 = vpop.f32.mrb[4].mxu0 }
 0x3ad   : > { %v658_v9 = vadd.f32 %v598_v8, %v2409_v12  ;;  %v1961_v10 = vpop.f32.mrb[5].mxu0  ;;  %v651_v21 = vadd.f32 %v598_v8, %v555_v20 }
 0x3ae   : > { %v601_v11 = vpop.f32.mrb[6].mxu0 }
 0x3af   : > { %660 = vrot.lane.b32.xlu0 %v658_v9, %s2256_s11  ;;  %v1962_v13 = vpop.f32.mrb[7].mxu0  ;;  %v1863_v23 = vmul.f32 -1.442695, %v651_v21  ;;  %v715_v9 = vld [vmem:[%s2327_s7 + $0x2] sm:$0x1] }
 0x3b0   : > { %v645_v15 = vpop.f32.mrb[4].mxu1  ;;  %v716_v11 = vld [vmem:[%s2337_s15 + $0x5] sm:$0x1] }
 0x3b1   : > { %v685_v16 = vadd.f32 %v645_v15, %v2411_v14  ;;  %v1969_v17 = vpop.f32.mrb[5].mxu1  ;;  %v678_v24 = vadd.f32 %v645_v15, %v556_v22  ;;  %2129 = vpow2.f32 %v1863_v23 }
 0x3b2   : > { %v648_v18 = vpop.f32.mrb[6].mxu1 }
 0x3b3   : > { %687 = vrot.lane.b32.xlu1 %v685_v16, %s2256_s11  ;;  %v1970_v19 = vpop.f32.mrb[7].mxu1  ;;  %v1864_v25 = vmul.f32 -1.442695, %v678_v24 }
 0x3b5   : > { %2131 = vpow2.f32 %v1864_v25 }
 0x3bb   : > { %v2130_v26 = vpop.eup %2129 }
 0x3bc   : > { %v655_v27 = vadd.f32 1.0, %v2130_v26 }
 0x3be   : > { %2133 = vrcp.f32 %v655_v27 }
 0x3bf   : > { %v2132_v28 = vpop.eup %2131 }
 0x3c0   : > { %v682_v29 = vadd.f32 1.0, %v2132_v28 }
 0x3c2   : > { %2135 = vrcp.f32 %v682_v29 }
 0x3c8   : > { %v2134_v30 = vpop.eup %2133 }
 0x3c9   : > { %v670_v42 = vsub.f32 1.0, %v2134_v30  ;;  %v676_v44 = vmul.f32 %v2134_v30, %v2425_v57 }
 0x3cc   : > { %v2136_v33 = vpop.eup %2135 }
 0x3cd   : > { %v697_v47 = vsub.f32 1.0, %v2136_v33  ;;  %v703_v49 = vmul.f32 %v2136_v33, %v2429_v63 }
 0x421   : > { %v661_v31 = vpop.permute.xlu0 %660 }
 0x422   : > { %v663_v32 = vmul.f32 %v2134_v30, %v661_v31 }
 0x424   : > { %665 = vrot.lane.b32.xlu0 %v663_v32, %s2256_s11 }
 0x425   : > { %v688_v34 = vpop.permute.xlu1 %687 }
 0x426   : > { %v690_v35 = vmul.f32 %v2136_v33, %v688_v34 }
 0x428   : > { %692 = vrot.lane.b32.xlu1 %v690_v35, %s2256_s11 }
 0x496   : > { %v666_v36 = vpop.permute.xlu0 %665 }
 0x497   : > { %v668_v37 = vadd.f32 %v666_v36, %v555_v20 }
 0x499   : > { %2137 = vtanh.f32 %v668_v37 }
 0x49a   : > { %v693_v38 = vpop.permute.xlu1 %692 }
 0x49b   : > { %v695_v39 = vadd.f32 %v693_v38, %v556_v22 }
 0x49d   : > { %2139 = vtanh.f32 %v695_v39 }
 0x4a3   : > { %v2138_v40 = vpop.eup %2137 }
 0x4a4   : > { %672 = vrot.lane.b32.xlu0 %v2138_v40, %s2258_s16 }
 0x4a7   : > { %v2140_v41 = vpop.eup %2139 }
 0x4a8   : > { %699 = vrot.lane.b32.xlu1 %v2140_v41, %s2258_s16 }
 0x516   : > { %v673_v43 = vpop.permute.xlu0 %672 }
 0x517   : > { %v675_v45 = vmul.f32 %v673_v43, %v670_v42 }
 0x519   : > { %v2460_v46 = vadd.f32 %v676_v44, %v675_v45 }
 0x51a   : > { %v700_v48 = vpop.permute.xlu1 %699 }
 0x51b   : > { %v702_v50 = vmul.f32 %v700_v48, %v697_v47  ;;  %v717_v51 = vpack.c.bf16 %v2460_v46, %v2460_v46 }
 0x51d   : > { %v2465_v52 = vadd.f32 %v703_v49, %v702_v50  ;;  %719 = vrot.lane.b32.xlu0 %v717_v51, %s2258_s16 }
 0x51f   : > { %v764_v53 = vpack.c.bf16 %v2465_v52, %v2465_v52 }
 0x521   : > { %766 = vrot.lane.b32.xlu1 %v764_v53, %s2258_s16 }
 0x58f   : > { %v720_v54 = vpop.permute.xlu0 %719 }
 0x590   : > { %1976 = vmatmul.mubr.msk.bf16.vlgmr.msra.gmra.mrb[8].mxu0 %vm358_vm2, %v720_v54 }
 0x591   : > { %1988 = vmatpush3.bf16.msra.mxu0 %v2348_v1  ;;  %1991 = vmatprep.mubr.msk.bf16.mxu0 %vm2255_vm1, %v2254_v2 }
 0x592   : > { %1989 = vmatprep.subr.bf16.mxu0 %v2254_v2 }
 0x593   : > { %v767_v55 = vpop.permute.xlu1 %766 }
 0x594   : > { %1984 = vmatmul.mubr.msk.bf16.vlgmr.msra.gmra.mrb[8].mxu1 %vm358_vm2, %v767_v55 }
 0x595   : > { %1996 = vmatpush3.bf16.msra.mxu1 %v2355_v3  ;;  %1990 = vmatpush3.bf16.msra.mxu0 %v2361_v4 }
 0x596   : > { %1997 = vmatprep.subr.bf16.mxu1 %v2254_v2  ;;  %1999 = vmatprep.mubr.msk.bf16.mxu1 %vm2255_vm1, %v2254_v2 }
 0x597   : > { %2003 = vmatprep.subr.bf16.mxu0 %v2254_v2 }
 0x599   : > { %1998 = vmatpush3.bf16.msra.mxu1 %v2370_v5 }
 0x59a   : > { %2011 = vmatprep.subr.bf16.mxu1 %v2254_v2 }
 0x663   : > { %v758_v56 = vpop.f32.mrb[8].mxu0 }
 0x664   : > { %v818_v58 = vadd.f32 %v758_v56, %v2409_v12  ;;  %v1977_v59 = vpop.f32.mrb[9].mxu0  ;;  %v811_v10 = vadd.f32 %v758_v56, %v715_v9 }
 0x665   : > { %v761_v60 = vpop.f32.mrb[10].mxu0 }
 0x666   : > { %820 = vrot.lane.b32.xlu0 %v818_v58, %s2256_s11  ;;  %v1978_v61 = vpop.f32.mrb[11].mxu0  ;;  %v1867_v13 = vmul.f32 -1.442695, %v811_v10  ;;  %v875_v60 = vld [vmem:[%s2327_s7 + $0x3] sm:$0x1] }
 0x667   : > { %v805_v62 = vpop.f32.mrb[8].mxu1 }
 0x668   : > { %v845_v0 = vadd.f32 %v805_v62, %v2411_v14  ;;  %v1985_v6 = vpop.f32.mrb[9].mxu1  ;;  %v838_v15 = vadd.f32 %v805_v62, %v716_v11  ;;  %2141 = vpow2.f32 %v1867_v13  ;;  %v876_v62 = vld [vmem:[%s2337_s15 + $0x4] sm:$0x1] }
 0x669   : > { %v808_v7 = vpop.f32.mrb[10].mxu1 }
 0x66a   : > { %847 = vrot.lane.b32.xlu1 %v845_v0, %s2256_s11  ;;  %v1986_v8 = vpop.f32.mrb[11].mxu1  ;;  %v1868_v16 = vmul.f32 -1.442695, %v838_v15 }
 0x66c   : > { %2143 = vpow2.f32 %v1868_v16 }
 0x672   : > { %v2142_v17 = vpop.eup %2141 }
 0x673   : > { %v815_v18 = vadd.f32 1.0, %v2142_v17 }
 0x675   : > { %2145 = vrcp.f32 %v815_v18 }
 0x676   : > { %v2144_v19 = vpop.eup %2143 }
 0x677   : > { %v842_v20 = vadd.f32 1.0, %v2144_v19 }
 0x679   : > { %2147 = vrcp.f32 %v842_v20 }
 0x67f   : > { %v2146_v21 = vpop.eup %2145 }
 0x680   : > { %v830_v33 = vsub.f32 1.0, %v2146_v21  ;;  %v836_v35 = vmul.f32 %v2146_v21, %v2460_v46 }
 0x683   : > { %v2148_v24 = vpop.eup %2147 }
 0x684   : > { %v857_v38 = vsub.f32 1.0, %v2148_v24  ;;  %v863_v40 = vmul.f32 %v2148_v24, %v2465_v52 }
 0x6d8   : > { %v821_v22 = vpop.permute.xlu0 %820 }
 0x6d9   : > { %v823_v23 = vmul.f32 %v2146_v21, %v821_v22 }
 0x6db   : > { %825 = vrot.lane.b32.xlu0 %v823_v23, %s2256_s11 }
 0x6dc   : > { %v848_v25 = vpop.permute.xlu1 %847 }
 0x6dd   : > { %v850_v26 = vmul.f32 %v2148_v24, %v848_v25 }
 0x6df   : > { %852 = vrot.lane.b32.xlu1 %v850_v26, %s2256_s11 }
 0x74d   : > { %v826_v27 = vpop.permute.xlu0 %825 }
 0x74e   : > { %v828_v28 = vadd.f32 %v826_v27, %v715_v9 }
 0x750   : > { %2149 = vtanh.f32 %v828_v28 }
 0x751   : > { %v853_v29 = vpop.permute.xlu1 %852 }
 0x752   : > { %v855_v30 = vadd.f32 %v853_v29, %v716_v11 }
 0x754   : > { %2151 = vtanh.f32 %v855_v30 }
 0x75a   : > { %v2150_v31 = vpop.eup %2149 }
 0x75b   : > { %832 = vrot.lane.b32.xlu0 %v2150_v31, %s2258_s16 }
 0x75e   : > { %v2152_v32 = vpop.eup %2151 }
 0x75f   : > { %859 = vrot.lane.b32.xlu1 %v2152_v32, %s2258_s16 }
 0x7cd   : > { %v833_v34 = vpop.permute.xlu0 %832 }
 0x7ce   : > { %v835_v36 = vmul.f32 %v833_v34, %v830_v33 }
 0x7d0   : > { %v2496_v37 = vadd.f32 %v836_v35, %v835_v36 }
 0x7d1   : > { %v860_v39 = vpop.permute.xlu1 %859 }
 0x7d2   : > { %v862_v41 = vmul.f32 %v860_v39, %v857_v38  ;;  %v877_v42 = vpack.c.bf16 %v2496_v37, %v2496_v37 }
 0x7d4   : > { %v2501_v43 = vadd.f32 %v863_v40, %v862_v41  ;;  %879 = vrot.lane.b32.xlu0 %v877_v42, %s2258_s16 }
 0x7d6   : > { %v924_v44 = vpack.c.bf16 %v2501_v43, %v2501_v43 }
 0x7d8   : > { %926 = vrot.lane.b32.xlu1 %v924_v44, %s2258_s16 }
 0x846   : > { %v880_v45 = vpop.permute.xlu0 %879 }
 0x847   : > { %1992 = vmatmul.mubr.msk.bf16.vlgmr.msra.gmra.mrb[12].mxu0 %vm358_vm2, %v880_v45 }
 0x848   : > { %2004 = vmatpush3.bf16.msra.mxu0 %v2348_v1  ;;  %2007 = vmatprep.mubr.msk.bf16.mxu0 %vm2255_vm1, %v2254_v2 }
 0x849   : > { %2005 = vmatprep.subr.bf16.mxu0 %v2254_v2 }
 0x84a   : > { %v927_v47 = vpop.permute.xlu1 %926 }
 0x84b   : > { %2000 = vmatmul.mubr.msk.bf16.vlgmr.msra.gmra.mrb[12].mxu1 %vm358_vm2, %v927_v47 }
 0x84c   : > { %2012 = vmatpush3.bf16.msra.mxu1 %v2355_v3  ;;  %2006 = vmatpush3.bf16.msra.mxu0 %v2361_v4 }
 0x84d   : > { %2013 = vmatprep.subr.bf16.mxu1 %v2254_v2  ;;  %2015 = vmatprep.mubr.msk.bf16.mxu1 %vm2255_vm1, %v2254_v2 }
 0x84e   : > { %2019 = vmatprep.subr.bf16.mxu0 %v2254_v2 }
 0x850   : > { %2014 = vmatpush3.bf16.msra.mxu1 %v2370_v5 }
 0x851   : > { %2027 = vmatprep.subr.bf16.mxu1 %v2254_v2 }
 0x91a   : > { %v918_v48 = vpop.f32.mrb[12].mxu0 }
 0x91b   : > { %v978_v49 = vadd.f32 %v918_v48, %v2409_v12  ;;  %v1993_v50 = vpop.f32.mrb[13].mxu0  ;;  %v971_v61 = vadd.f32 %v918_v48, %v875_v60 }
 0x91c   : > { %v921_v51 = vpop.f32.mrb[14].mxu0 }
 0x91d   : > { %980 = vrot.lane.b32.xlu0 %v978_v49, %s2256_s11  ;;  %v1994_v53 = vpop.f32.mrb[15].mxu0  ;;  %v1871_v0 = vmul.f32 -1.442695, %v971_v61 }
 0x91e   : > { %v965_v54 = vpop.f32.mrb[12].mxu1 }
 0x91f   : > { %v1005_v55 = vadd.f32 %v965_v54, %v2411_v14  ;;  %v2001_v56 = vpop.f32.mrb[13].mxu1  ;;  %v998_v6 = vadd.f32 %v965_v54, %v876_v62  ;;  %2153 = vpow2.f32 %v1871_v0  ;;  %v1035_v54 = vld [vmem:[%s2327_s7 + $0x4] sm:$0x1] }
 0x920   : > { %v968_v58 = vpop.f32.mrb[14].mxu1  ;;  %v1036_v56 = vld [vmem:[%s2337_s15 + $0x3] sm:$0x1] }
 0x921   : > { %1007 = vrot.lane.b32.xlu1 %v1005_v55, %s2256_s11  ;;  %v2002_v59 = vpop.f32.mrb[15].mxu1  ;;  %v1872_v7 = vmul.f32 -1.442695, %v998_v6 }
 0x923   : > { %2155 = vpow2.f32 %v1872_v7 }
 0x929   : > { %v2154_v8 = vpop.eup %2153 }
 0x92a   : > { %v975_v9 = vadd.f32 1.0, %v2154_v8 }
 0x92c   : > { %2157 = vrcp.f32 %v975_v9 }
 0x92d   : > { %v2156_v10 = vpop.eup %2155 }
 0x92e   : > { %v1002_v11 = vadd.f32 1.0, %v2156_v10 }
 0x930   : > { %2159 = vrcp.f32 %v1002_v11 }
 0x936   : > { %v2158_v13 = vpop.eup %2157 }
 0x937   : > { %v990_v26 = vsub.f32 1.0, %v2158_v13  ;;  %v996_v28 = vmul.f32 %v2158_v13, %v2496_v37 }
 0x93a   : > { %v2160_v17 = vpop.eup %2159 }
 0x93b   : > { %v1017_v31 = vsub.f32 1.0, %v2160_v17  ;;  %v1023_v33 = vmul.f32 %v2160_v17, %v2501_v43 }
 0x98f   : > { %v981_v15 = vpop.permute.xlu0 %980 }
 0x990   : > { %v983_v16 = vmul.f32 %v2158_v13, %v981_v15 }
 0x992   : > { %985 = vrot.lane.b32.xlu0 %v983_v16, %s2256_s11 }
 0x993   : > { %v1008_v18 = vpop.permute.xlu1 %1007 }
 0x994   : > { %v1010_v19 = vmul.f32 %v2160_v17, %v1008_v18 }
 0x996   : > { %1012 = vrot.lane.b32.xlu1 %v1010_v19, %s2256_s11 }
 0xa04   : > { %v986_v20 = vpop.permute.xlu0 %985 }
 0xa05   : > { %v988_v21 = vadd.f32 %v986_v20, %v875_v60 }
 0xa07   : > { %2161 = vtanh.f32 %v988_v21 }
 0xa08   : > { %v1013_v22 = vpop.permute.xlu1 %1012 }
 0xa09   : > { %v1015_v23 = vadd.f32 %v1013_v22, %v876_v62 }
 0xa0b   : > { %2163 = vtanh.f32 %v1015_v23 }
 0xa11   : > { %v2162_v24 = vpop.eup %2161 }
 0xa12   : > { %992 = vrot.lane.b32.xlu0 %v2162_v24, %s2258_s16 }
 0xa15   : > { %v2164_v25 = vpop.eup %2163 }
 0xa16   : > { %1019 = vrot.lane.b32.xlu1 %v2164_v25, %s2258_s16 }
 0xa84   : > { %v993_v27 = vpop.permute.xlu0 %992 }
 0xa85   : > { %v995_v29 = vmul.f32 %v993_v27, %v990_v26 }
 0xa87   : > { %v2532_v30 = vadd.f32 %v996_v28, %v995_v29 }
 0xa88   : > { %v1020_v32 = vpop.permute.xlu1 %1019 }
 0xa89   : > { %v1022_v34 = vmul.f32 %v1020_v32, %v1017_v31  ;;  %v1037_v35 = vpack.c.bf16 %v2532_v30, %v2532_v30 }
 0xa8b   : > { %v2537_v36 = vadd.f32 %v1023_v33, %v1022_v34  ;;  %1039 = vrot.lane.b32.xlu0 %v1037_v35, %s2258_s16 }
 0xa8d   : > { %v1084_v38 = vpack.c.bf16 %v2537_v36, %v2537_v36 }
 0xa8f   : > { %1086 = vrot.lane.b32.xlu1 %v1084_v38, %s2258_s16 }
 0xafd   : > { %v1040_v39 = vpop.permute.xlu0 %1039 }
 0xafe   : > { %2008 = vmatmul.mubr.msk.bf16.vlgmr.msra.gmra.mrb[16].mxu0 %vm358_vm2, %v1040_v39 }
 0xaff   : > { %2020 = vmatpush3.bf16.msra.mxu0 %v2348_v1  ;;  %2023 = vmatprep.mubr.msk.bf16.mxu0 %vm2255_vm1, %v2254_v2 }
 0xb00   : > { %2021 = vmatprep.subr.bf16.mxu0 %v2254_v2 }
 0xb01   : > { %v1087_v40 = vpop.permute.xlu1 %1086 }
 0xb02   : > { %2016 = vmatmul.mubr.msk.bf16.vlgmr.msra.gmra.mrb[16].mxu1 %vm358_vm2, %v1087_v40 }
 0xb03   : > { %2028 = vmatpush3.bf16.msra.mxu1 %v2355_v3  ;;  %2022 = vmatpush3.bf16.msra.mxu0 %v2361_v4 }
 0xb04   : > { %2029 = vmatprep.subr.bf16.mxu1 %v2254_v2  ;;  %2031 = vmatprep.mubr.msk.bf16.mxu1 %vm2255_vm1, %v2254_v2 }
 0xb05   : > { %2035 = vmatprep.subr.bf16.mxu0 %v2254_v2 }
 0xb07   : > { %2030 = vmatpush3.bf16.msra.mxu1 %v2370_v5 }
 0xb08   : > { %2043 = vmatprep.subr.bf16.mxu1 %v2254_v2 }
 0xbd1   : > { %v1078_v41 = vpop.f32.mrb[16].mxu0 }
 0xbd2   : > { %v1138_v42 = vadd.f32 %v1078_v41, %v2409_v12  ;;  %v2009_v44 = vpop.f32.mrb[17].mxu0  ;;  %v1131_v55 = vadd.f32 %v1078_v41, %v1035_v54 }
 0xbd3   : > { %v1081_v45 = vpop.f32.mrb[18].mxu0 }
 0xbd4   : > { %1140 = vrot.lane.b32.xlu0 %v1138_v42, %s2256_s11  ;;  %v2010_v47 = vpop.f32.mrb[19].mxu0  ;;  %v1875_v58 = vmul.f32 -1.442695, %v1131_v55 }
 0xbd5   : > { %v1125_v48 = vpop.f32.mrb[16].mxu1 }
 0xbd6   : > { %v1165_v49 = vadd.f32 %v1125_v48, %v2411_v14  ;;  %v2017_v50 = vpop.f32.mrb[17].mxu1  ;;  %v1158_v59 = vadd.f32 %v1125_v48, %v1036_v56  ;;  %2165 = vpow2.f32 %v1875_v58 }
 0xbd7   : > { %v1128_v51 = vpop.f32.mrb[18].mxu1  ;;  %v1195_v50 = vld [vmem:[%s2327_s7 + $0x5] sm:$0x1] }
 0xbd8   : > { %1167 = vrot.lane.b32.xlu1 %v1165_v49, %s2256_s11  ;;  %v2018_v53 = vpop.f32.mrb[19].mxu1  ;;  %v1876_v60 = vmul.f32 -1.442695, %v1158_v59 }
 0xbd9   : > { %v1196_v53 = vld [vmem:[%s2337_s15 + $0x2] sm:$0x1] }
 0xbda   : > { %2167 = vpow2.f32 %v1876_v60 }
 0xbe0   : > { %v2166_v61 = vpop.eup %2165 }
 0xbe1   : > { %v1135_v62 = vadd.f32 1.0, %v2166_v61 }
 0xbe3   : > { %2169 = vrcp.f32 %v1135_v62 }
 0xbe4   : > { %v2168_v0 = vpop.eup %2167 }
 0xbe5   : > { %v1162_v6 = vadd.f32 1.0, %v2168_v0 }
 0xbe7   : > { %2171 = vrcp.f32 %v1162_v6 }
 0xbed   : > { %v2170_v7 = vpop.eup %2169 }
 0xbee   : > { %v1150_v21 = vsub.f32 1.0, %v2170_v7  ;;  %v1156_v23 = vmul.f32 %v2170_v7, %v2532_v30 }
 0xbf1   : > { %v2172_v10 = vpop.eup %2171 }
 0xbf2   : > { %v1177_v26 = vsub.f32 1.0, %v2172_v10  ;;  %v1183_v28 = vmul.f32 %v2172_v10, %v2537_v36 }
 0xc46   : > { %v1141_v8 = vpop.permute.xlu0 %1140 }
 0xc47   : > { %v1143_v9 = vmul.f32 %v2170_v7, %v1141_v8 }
 0xc49   : > { %1145 = vrot.lane.b32.xlu0 %v1143_v9, %s2256_s11 }
 0xc4a   : > { %v1168_v11 = vpop.permute.xlu1 %1167 }
 0xc4b   : > { %v1170_v13 = vmul.f32 %v2172_v10, %v1168_v11 }
 0xc4d   : > { %1172 = vrot.lane.b32.xlu1 %v1170_v13, %s2256_s11 }
 0xcbb   : > { %v1146_v15 = vpop.permute.xlu0 %1145 }
 0xcbc   : > { %v1148_v16 = vadd.f32 %v1146_v15, %v1035_v54 }
 0xcbe   : > { %2173 = vtanh.f32 %v1148_v16 }
 0xcbf   : > { %v1173_v17 = vpop.permute.xlu1 %1172 }
 0xcc0   : > { %v1175_v18 = vadd.f32 %v1173_v17, %v1036_v56 }
 0xcc2   : > { %2175 = vtanh.f32 %v1175_v18 }
 0xcc8   : > { %v2174_v19 = vpop.eup %2173 }
 0xcc9   : > { %1152 = vrot.lane.b32.xlu0 %v2174_v19, %s2258_s16 }
 0xccc   : > { %v2176_v20 = vpop.eup %2175 }
 0xccd   : > { %1179 = vrot.lane.b32.xlu1 %v2176_v20, %s2258_s16 }
 0xd3b   : > { %v1153_v22 = vpop.permute.xlu0 %1152 }
 0xd3c   : > { %v1155_v24 = vmul.f32 %v1153_v22, %v1150_v21 }
 0xd3e   : > { %v2568_v25 = vadd.f32 %v1156_v23, %v1155_v24 }
 0xd3f   : > { %v1180_v27 = vpop.permute.xlu1 %1179 }
 0xd40   : > { %v1182_v29 = vmul.f32 %v1180_v27, %v1177_v26  ;;  %v1197_v31 = vpack.c.bf16 %v2568_v25, %v2568_v25 }
 0xd42   : > { %v2573_v32 = vadd.f32 %v1183_v28, %v1182_v29  ;;  %1199 = vrot.lane.b32.xlu0 %v1197_v31, %s2258_s16 }
 0xd44   : > { %v1244_v33 = vpack.c.bf16 %v2573_v32, %v2573_v32 }
 0xd46   : > { %1246 = vrot.lane.b32.xlu1 %v1244_v33, %s2258_s16 }
 0xdb4   : > { %v1200_v34 = vpop.permute.xlu0 %1199 }
 0xdb5   : > { %2024 = vmatmul.mubr.msk.bf16.vlgmr.msra.gmra.mrb[20].mxu0 %vm358_vm2, %v1200_v34 }
 0xdb6   : > { %2036 = vmatpush3.bf16.msra.mxu0 %v2348_v1  ;;  %2039 = vmatprep.mubr.msk.bf16.mxu0 %vm2255_vm1, %v2254_v2 }
 0xdb7   : > { %2037 = vmatprep.subr.bf16.mxu0 %v2254_v2 }
 0xdb8   : > { %v1247_v35 = vpop.permute.xlu1 %1246 }
 0xdb9   : > { %2032 = vmatmul.mubr.msk.bf16.vlgmr.msra.gmra.mrb[20].mxu1 %vm358_vm2, %v1247_v35 }
 0xdba   : > { %2044 = vmatpush3.bf16.msra.mxu1 %v2355_v3  ;;  %2038 = vmatpush3.bf16.msra.mxu0 %v2361_v4 }
 0xdbb   : > { %2045 = vmatprep.subr.bf16.mxu1 %v2254_v2  ;;  %2047 = vmatprep.mubr.msk.bf16.mxu1 %vm2255_vm1, %v2254_v2 }
 0xdbc   : > { %2051 = vmatprep.subr.bf16.mxu0 %v2254_v2 }
 0xdbe   : > { %2046 = vmatpush3.bf16.msra.mxu1 %v2370_v5 }
 0xdbf   : > { %2059 = vmatprep.subr.bf16.mxu1 %v2254_v2 }
 0xe88   : > { %v1238_v38 = vpop.f32.mrb[20].mxu0 }
 0xe89   : > { %v1298_v39 = vadd.f32 %v1238_v38, %v2409_v12  ;;  %v2025_v40 = vpop.f32.mrb[21].mxu0  ;;  %v1291_v51 = vadd.f32 %v1238_v38, %v1195_v50 }
 0xe8a   : > { %v1241_v41 = vpop.f32.mrb[22].mxu0 }
 0xe8b   : > { %1300 = vrot.lane.b32.xlu0 %v1298_v39, %s2256_s11  ;;  %v2026_v42 = vpop.f32.mrb[23].mxu0  ;;  %v1879_v54 = vmul.f32 -1.442695, %v1291_v51 }
 0xe8c   : > { %v1285_v44 = vpop.f32.mrb[20].mxu1 }
 0xe8d   : > { %v1325_v45 = vadd.f32 %v1285_v44, %v2411_v14  ;;  %v2033_v47 = vpop.f32.mrb[21].mxu1  ;;  %v1318_v55 = vadd.f32 %v1285_v44, %v1196_v53  ;;  %2177 = vpow2.f32 %v1879_v54 }
 0xe8e   : > { %v1288_v48 = vpop.f32.mrb[22].mxu1  ;;  %v1356_v47 = vld [vmem:[%s2337_s15 + $0x1] sm:$0x1] }
 0xe8f   : > { %1327 = vrot.lane.b32.xlu1 %v1325_v45, %s2256_s11  ;;  %v2034_v49 = vpop.f32.mrb[23].mxu1  ;;  %v1880_v56 = vmul.f32 -1.442695, %v1318_v55 }
 0xe91   : > { %2179 = vpow2.f32 %v1880_v56 }
 0xe97   : > { %v2178_v58 = vpop.eup %2177 }
 0xe98   : > { %v1295_v59 = vadd.f32 1.0, %v2178_v58 }
 0xe9a   : > { %2181 = vrcp.f32 %v1295_v59 }
 0xe9b   : > { %v2180_v60 = vpop.eup %2179 }
 0xe9c   : > { %v1322_v61 = vadd.f32 1.0, %v2180_v60 }
 0xe9e   : > { %2183 = vrcp.f32 %v1322_v61 }
 0xea4   : > { %v2182_v62 = vpop.eup %2181 }
 0xea5   : > { %v1310_v18 = vsub.f32 1.0, %v2182_v62  ;;  %v1316_v20 = vmul.f32 %v2182_v62, %v2568_v25 }
 0xea8   : > { %v2184_v7 = vpop.eup %2183 }
 0xea9   : > { %v1337_v23 = vsub.f32 1.0, %v2184_v7  ;;  %v1343_v26 = vmul.f32 %v2184_v7, %v2573_v32 }
 0xefd   : > { %v1301_v0 = vpop.permute.xlu0 %1300 }
 0xefe   : > { %v1303_v6 = vmul.f32 %v2182_v62, %v1301_v0 }
 0xf00   : > { %1305 = vrot.lane.b32.xlu0 %v1303_v6, %s2256_s11 }
 0xf01   : > { %v1328_v8 = vpop.permute.xlu1 %1327 }
 0xf02   : > { %v1330_v9 = vmul.f32 %v2184_v7, %v1328_v8 }
 0xf04   : > { %1332 = vrot.lane.b32.xlu1 %v1330_v9, %s2256_s11 }
 0xf72   : > { %v1306_v10 = vpop.permute.xlu0 %1305 }
 0xf73   : > { %v1308_v11 = vadd.f32 %v1306_v10, %v1195_v50 }
 0xf75   : > { %2185 = vtanh.f32 %v1308_v11 }
 0xf76   : > { %v1333_v13 = vpop.permute.xlu1 %1332 }
 0xf77   : > { %v1335_v15 = vadd.f32 %v1333_v13, %v1196_v53 }
 0xf79   : > { %2187 = vtanh.f32 %v1335_v15 }
 0xf7f   : > { %v2186_v16 = vpop.eup %2185 }
 0xf80   : > { %1312 = vrot.lane.b32.xlu0 %v2186_v16, %s2258_s16 }
 0xf83   : > { %v2188_v17 = vpop.eup %2187 }
 0xf84   : > { %1339 = vrot.lane.b32.xlu1 %v2188_v17, %s2258_s16 }
 0xff2   : > { %v1313_v19 = vpop.permute.xlu0 %1312 }
 0xff3   : > { %v1315_v21 = vmul.f32 %v1313_v19, %v1310_v18 }
 0xff5   : > { %v2604_v22 = vadd.f32 %v1316_v20, %v1315_v21 }
 0xff6   : > { %v1340_v24 = vpop.permute.xlu1 %1339 }
 0xff7   : > { %v1342_v27 = vmul.f32 %v1340_v24, %v1337_v23  ;;  %v1357_v28 = vpack.c.bf16 %v2604_v22, %v2604_v22 }
 0xff9   : > { %v2609_v29 = vadd.f32 %v1343_v26, %v1342_v27  ;;  %1359 = vrot.lane.b32.xlu0 %v1357_v28, %s2258_s16 }
 0xffb   : > { %v1404_v31 = vpack.c.bf16 %v2609_v29, %v2609_v29 }
 0xffd   : > { %1406 = vrot.lane.b32.xlu1 %v1404_v31, %s2258_s16 }
0x106b   : > { %v1360_v33 = vpop.permute.xlu0 %1359 }
0x106c   : > { %2040 = vmatmul.mubr.msk.bf16.vlgmr.msra.gmra.mrb[24].mxu0 %vm358_vm2, %v1360_v33 }
0x106d   : > { %2052 = vmatpush3.bf16.msra.mxu0 %v2348_v1  ;;  %2055 = vmatprep.mubr.msk.bf16.mxu0 %vm2255_vm1, %v2254_v2 }
0x106e   : > { %2053 = vmatprep.subr.bf16.mxu0 %v2254_v2 }
0x106f   : > { %v1407_v34 = vpop.permute.xlu1 %1406 }
0x1070   : > { %2048 = vmatmul.mubr.msk.bf16.vlgmr.msra.gmra.mrb[24].mxu1 %vm358_vm2, %v1407_v34 }
0x1071   : > { %2060 = vmatpush3.bf16.msra.mxu1 %v2355_v3  ;;  %2054 = vmatpush3.bf16.msra.mxu0 %v2361_v4 }
0x1072   : > { %2061 = vmatprep.subr.bf16.mxu1 %v2254_v2  ;;  %2063 = vmatprep.mubr.msk.bf16.mxu1 %vm2255_vm1, %v2254_v2  ;;  %v1355_v2 = vld [vmem:[%s2327_s7 + $0x6] sm:$0x1] }
0x1075   : > { %2062 = vmatpush3.bf16.msra.mxu1 %v2370_v5 }
0x113f   : > { %v1398_v1 = vpop.f32.mrb[24].mxu0 }
0x1140   : > { %v1458_v35 = vadd.f32 %v1398_v1, %v2409_v12  ;;  %v2041_v38 = vpop.f32.mrb[25].mxu0  ;;  %v1451_v45 = vadd.f32 %v1398_v1, %v1355_v2 }
0x1141   : > { %v1401_v39 = vpop.f32.mrb[26].mxu0 }
0x1142   : > { %1460 = vrot.lane.b32.xlu0 %v1458_v35, %s2256_s11  ;;  %v2042_v40 = vpop.f32.mrb[27].mxu0  ;;  %v1883_v5 = vmul.f32 -1.442695, %v1451_v45 }
0x1143   : > { %v1445_v3 = vpop.f32.mrb[24].mxu1 }
0x1144   : > { %v1485_v4 = vadd.f32 %v1445_v3, %v2411_v14  ;;  %v2049_v41 = vpop.f32.mrb[25].mxu1  ;;  %v1478_v48 = vadd.f32 %v1445_v3, %v1356_v47  ;;  %2189 = vpow2.f32 %v1883_v5 }
0x1145   : > { %v1448_v42 = vpop.f32.mrb[26].mxu1 }
0x1146   : > { %1487 = vrot.lane.b32.xlu1 %v1485_v4, %s2256_s11  ;;  %v2050_v44 = vpop.f32.mrb[27].mxu1  ;;  %v1884_v49 = vmul.f32 -1.442695, %v1478_v48  ;;  %v1515_v4 = vld [vmem:[%s2327_s7 + $0x7] sm:$0x1] }
0x1147   : > { %v1516_v42 = vld [vmem:[%s2337_s15] sm:$0x1] }
0x1148   : > { %2191 = vpow2.f32 %v1884_v49 }
0x114e   : > { %v2190_v50 = vpop.eup %2189 }
0x114f   : > { %v1455_v51 = vadd.f32 1.0, %v2190_v50 }
0x1151   : > { %2193 = vrcp.f32 %v1455_v51 }
0x1152   : > { %v2192_v53 = vpop.eup %2191 }
0x1153   : > { %v1482_v54 = vadd.f32 1.0, %v2192_v53 }
0x1155   : > { %2195 = vrcp.f32 %v1482_v54 }
0x115b   : > { %v2194_v55 = vpop.eup %2193 }
0x115c   : > { %v1470_v10 = vsub.f32 1.0, %v2194_v55  ;;  %v1476_v13 = vmul.f32 %v2194_v55, %v2604_v22 }
0x115f   : > { %v2196_v59 = vpop.eup %2195 }
0x1160   : > { %v1497_v17 = vsub.f32 1.0, %v2196_v59  ;;  %v1503_v19 = vmul.f32 %v2196_v59, %v2609_v29 }
0x11b4   : > { %v1461_v56 = vpop.permute.xlu0 %1460 }
0x11b5   : > { %v1463_v58 = vmul.f32 %v2194_v55, %v1461_v56 }
0x11b7   : > { %1465 = vrot.lane.b32.xlu0 %v1463_v58, %s2256_s11 }
0x11b8   : > { %v1488_v60 = vpop.permute.xlu1 %1487 }
0x11b9   : > { %v1490_v61 = vmul.f32 %v2196_v59, %v1488_v60 }
0x11bb   : > { %1492 = vrot.lane.b32.xlu1 %v1490_v61, %s2256_s11 }
0x1229   : > { %v1466_v62 = vpop.permute.xlu0 %1465 }
0x122a   : > { %v1468_v0 = vadd.f32 %v1466_v62, %v1355_v2 }
0x122c   : > { %2197 = vtanh.f32 %v1468_v0 }
0x122d   : > { %v1493_v6 = vpop.permute.xlu1 %1492 }
0x122e   : > { %v1495_v7 = vadd.f32 %v1493_v6, %v1356_v47 }
0x1230   : > { %2199 = vtanh.f32 %v1495_v7 }
0x1236   : > { %v2198_v8 = vpop.eup %2197 }
0x1237   : > { %1472 = vrot.lane.b32.xlu0 %v2198_v8, %s2258_s16 }
0x123a   : > { %v2200_v9 = vpop.eup %2199 }
0x123b   : > { %1499 = vrot.lane.b32.xlu1 %v2200_v9, %s2258_s16 }
0x12a9   : > { %v1473_v11 = vpop.permute.xlu0 %1472 }
0x12aa   : > { %v1475_v15 = vmul.f32 %v1473_v11, %v1470_v10 }
0x12ac   : > { %v2638_v16 = vadd.f32 %v1476_v13, %v1475_v15 }
0x12ad   : > { %v1500_v18 = vpop.permute.xlu1 %1499 }
0x12ae   : > { %v1502_v20 = vmul.f32 %v1500_v18, %v1497_v17  ;;  %v1517_v21 = vpack.c.bf16 %v2638_v16, %v2638_v16 }
0x12b0   : > { %v2643_v23 = vadd.f32 %v1503_v19, %v1502_v20  ;;  %1519 = vrot.lane.b32.xlu0 %v1517_v21, %s2258_s16 }
0x12b2   : > { %v1564_v24 = vpack.c.bf16 %v2643_v23, %v2643_v23 }
0x12b4   : > { %1566 = vrot.lane.b32.xlu1 %v1564_v24, %s2258_s16 }
0x1322   : > { %v1520_v26 = vpop.permute.xlu0 %1519 }
0x1323   : > { %2056 = vmatmul.mubr.msk.bf16.vlgmr.msra.gmra.mrb[28].mxu0 %vm358_vm2, %v1520_v26 }
0x1326   : > { %v1567_v27 = vpop.permute.xlu1 %1566 }
0x1327   : > { %2064 = vmatmul.mubr.msk.bf16.vlgmr.msra.gmra.mrb[28].mxu1 %vm358_vm2, %v1567_v27 }
0x13f6   : > { %v1558_v28 = vpop.f32.mrb[28].mxu0 }
0x13f7   : > { %v1618_v31 = vadd.f32 %v1558_v28, %v2409_v12  ;;  %v2057_v33 = vpop.f32.mrb[29].mxu0  ;;  %v1611_v41 = vadd.f32 %v1558_v28, %v1515_v4 }
0x13f8   : > { %v1561_v34 = vpop.f32.mrb[30].mxu0 }
0x13f9   : > { %1620 = vrot.lane.b32.xlu0 %v1618_v31, %s2256_s11  ;;  %v2058_v1 = vpop.f32.mrb[31].mxu0  ;;  %v1887_v44 = vmul.f32 -1.442695, %v1611_v41 }
0x13fa   : > { %v1605_v35 = vpop.f32.mrb[28].mxu1 }
0x13fb   : > { %v1645_v38 = vadd.f32 %v1605_v35, %v2411_v14  ;;  %v2065_v39 = vpop.f32.mrb[29].mxu1  ;;  %v1638_v2 = vadd.f32 %v1605_v35, %v1516_v42  ;;  %2201 = vpow2.f32 %v1887_v44 }
0x13fc   : > { %v1608_v40 = vpop.f32.mrb[30].mxu1 }
0x13fd   : > { %1647 = vrot.lane.b32.xlu1 %v1645_v38, %s2256_s11  ;;  %v2066_v3 = vpop.f32.mrb[31].mxu1  ;;  %v1888_v12 = vmul.f32 -1.442695, %v1638_v2 }
0x13ff   : > { %2203 = vpow2.f32 %v1888_v12 }
0x1405   : > { %v2202_v45 = vpop.eup %2201 }
0x1406   : > { %v1615_v47 = vadd.f32 1.0, %v2202_v45 }
0x1408   : > { %2205 = vrcp.f32 %v1615_v47 }
0x1409   : > { %v2204_v5 = vpop.eup %2203 }
0x140a   : > { %v1642_v48 = vadd.f32 1.0, %v2204_v5 }
0x140c   : > { %2207 = vrcp.f32 %v1642_v48 }
0x1412   : > { %v2206_v14 = vpop.eup %2205 }
0x1416   : > { %v2208_v51 = vpop.eup %2207 }
0x146b   : > { %v1621_v49 = vpop.permute.xlu0 %1620 }
0x146c   : > { %v1623_v50 = vmul.f32 %v2206_v14, %v1621_v49 }
0x146e   : > { %1625 = vrot.lane.b32.xlu0 %v1623_v50, %s2256_s11 }
0x146f   : > { %v1648_v53 = vpop.permute.xlu1 %1647 }
0x1470   : > { %v1650_v54 = vmul.f32 %v2208_v51, %v1648_v53 }
0x1472   : > { %1652 = vrot.lane.b32.xlu1 %v1650_v54, %s2256_s11 }
0x14e0   : > { %v1626_v55 = vpop.permute.xlu0 %1625 }
0x14e1   : > { %v1628_v56 = vadd.f32 %v1626_v55, %v1515_v4 }
0x14e3   : > { %2209 = vtanh.f32 %v1628_v56 }
0x14e4   : > { %v1653_v58 = vpop.permute.xlu1 %1652 }
0x14e5   : > { %v1655_v59 = vadd.f32 %v1653_v58, %v1516_v42 }
0x14e7   : > { %2211 = vtanh.f32 %v1655_v59 }
0x14ed   : > { %v2210_v60 = vpop.eup %2209 }
0x14ee   : > { %1632 = vrot.lane.b32.xlu0 %v2210_v60, %s2258_s16 }
0x14f1   : > { %v2212_v61 = vpop.eup %2211 }
0x14f2   : > { %1659 = vrot.lane.b32.xlu1 %v2212_v61, %s2258_s16  ;;  %545 = vrot.lane.b32.xlu0 %v2425_v57, %s2258_s16  ;;  %v1630_v57 = vsub.f32 1.0, %v2206_v14 }
0x14f6   : > { %551 = vrot.lane.b32.xlu1 %v2429_v63, %s2258_s16  ;;  %706 = vrot.lane.b32.xlu0 %v2460_v46, %s2258_s16  ;;  %v1636_v46 = vmul.f32 %v2206_v14, %v2638_v16 }
0x14fa   : > { %711 = vrot.lane.b32.xlu1 %v2465_v52, %s2258_s16  ;;  %866 = vrot.lane.b32.xlu0 %v2496_v37, %s2258_s16 }
0x14fe   : > { %871 = vrot.lane.b32.xlu1 %v2501_v43, %s2258_s16  ;;  %1026 = vrot.lane.b32.xlu0 %v2532_v30, %s2258_s16  ;;  %v1657_v43 = vsub.f32 1.0, %v2208_v51 }
0x1502   : > { %1031 = vrot.lane.b32.xlu1 %v2537_v36, %s2258_s16  ;;  %1186 = vrot.lane.b32.xlu0 %v2568_v25, %s2258_s16  ;;  %v1663_v25 = vmul.f32 %v2208_v51, %v2643_v23 }
0x1506   : > { %1191 = vrot.lane.b32.xlu1 %v2573_v32, %s2258_s16  ;;  %1346 = vrot.lane.b32.xlu0 %v2604_v22, %s2258_s16 }
0x150a   : > { %1351 = vrot.lane.b32.xlu1 %v2609_v29, %s2258_s16  ;;  %1506 = vrot.lane.b32.xlu0 %v2638_v16, %s2258_s16 }
0x150e   : > { %1511 = vrot.lane.b32.xlu1 %v2643_v23, %s2258_s16 }
0x1560   : > { %v1633_v63 = vpop.permute.xlu0 %1632 }
0x1561   : > { %v1635_v52 = vmul.f32 %v1633_v63, %v1630_v57 }
0x1563   : > { %v1637_v37 = vadd.f32 %v1636_v46, %v1635_v52 }
0x1564   : > { %v1660_v30 = vpop.permute.xlu1 %1659  ;;  %v546_v36 = vpop.permute.xlu0 %545 }
0x1565   : > { %v1662_v32 = vmul.f32 %v1660_v30, %v1657_v43  ;;  %549 = vst.msk [vmem:[%s2332_s10] sm:$0x1] %vm548_vm3, %v546_v36  ;;  %1666 = vrot.lane.b32.xlu0 %v1637_v37, %s2258_s16 }
0x1567   : > { %v1664_v22 = vadd.f32 %v1663_v25, %v1662_v32 }
0x1568   : > { %v552_v29 = vpop.permute.xlu1 %551  ;;  %v707_v62 = vpop.permute.xlu0 %706 }
0x1569   : > { %554 = vst.msk [vmem:[%s2342_s19 + $0x7] sm:$0x1] %vm548_vm3, %v552_v29  ;;  %709 = vst.msk [vmem:[%s2332_s10 + $0x1] sm:$0x1] %vm548_vm3, %v707_v62  ;;  %1671 = vrot.lane.b32.xlu1 %v1664_v22, %s2258_s16 }
0x156c   : > { %v712_v0 = vpop.permute.xlu1 %711  ;;  %v867_v6 = vpop.permute.xlu0 %866 }
0x156d   : > { %714 = vst.msk [vmem:[%s2342_s19 + $0x6] sm:$0x1] %vm548_vm3, %v712_v0  ;;  %869 = vst.msk [vmem:[%s2332_s10 + $0x2] sm:$0x1] %vm548_vm3, %v867_v6 }
0x1570   : > { %v872_v7 = vpop.permute.xlu1 %871  ;;  %v1027_v8 = vpop.permute.xlu0 %1026 }
0x1571   : > { %874 = vst.msk [vmem:[%s2342_s19 + $0x5] sm:$0x1] %vm548_vm3, %v872_v7  ;;  %1029 = vst.msk [vmem:[%s2332_s10 + $0x3] sm:$0x1] %vm548_vm3, %v1027_v8 }
0x1574   : > { %v1032_v9 = vpop.permute.xlu1 %1031  ;;  %v1187_v10 = vpop.permute.xlu0 %1186 }
0x1575   : > { %1034 = vst.msk [vmem:[%s2342_s19 + $0x4] sm:$0x1] %vm548_vm3, %v1032_v9  ;;  %1189 = vst.msk [vmem:[%s2332_s10 + $0x4] sm:$0x1] %vm548_vm3, %v1187_v10 }
0x1578   : > { %v1192_v11 = vpop.permute.xlu1 %1191  ;;  %v1347_v13 = vpop.permute.xlu0 %1346 }
0x1579   : > { %1194 = vst.msk [vmem:[%s2342_s19 + $0x3] sm:$0x1] %vm548_vm3, %v1192_v11  ;;  %1349 = vst.msk [vmem:[%s2332_s10 + $0x5] sm:$0x1] %vm548_vm3, %v1347_v13 }
0x157c   : > { %v1352_v15 = vpop.permute.xlu1 %1351  ;;  %v1507_v16 = vpop.permute.xlu0 %1506 }
0x157d   : > { %1354 = vst.msk [vmem:[%s2342_s19 + $0x2] sm:$0x1] %vm548_vm3, %v1352_v15  ;;  %1509 = vst.msk [vmem:[%s2332_s10 + $0x6] sm:$0x1] %vm548_vm3, %v1507_v16 }
0x1580   : > { %v1512_v17 = vpop.permute.xlu1 %1511 }
0x1581   : > { %1514 = vst.msk [vmem:[%s2342_s19 + $0x1] sm:$0x1] %vm548_vm3, %v1512_v17 }
0x15d7   : > { %v1667_v18 = vpop.permute.xlu0 %1666 }
0x15d8   : > { %1669 = vst.msk [vmem:[%s2332_s10 + $0x7] sm:$0x1] %vm548_vm3, %v1667_v18  ;;  %1675 = vst.msk [vmem:[#allocation2] sm:$0x1] %vm548_vm3, %v1667_v18 }
0x15db   : > { %v1672_v19 = vpop.permute.xlu1 %1671 }
0x15dc   : > { %1674 = vst.msk [vmem:[%s2342_s19] sm:$0x1] %vm548_vm3, %v1672_v19  ;;  %1676 = vst.msk [vmem:[#allocation2 + $0x1] sm:$0x1] %vm548_vm3, %v1672_v19 }
0x15dd PF: > { %s16_s22 = sadd.s32 1, %s2251_s22   ;;  %s2748_s18 = smov %s2243_s20 }
0x15de   : > { %p13_p9 = scmp.ge.s32.totalorder %s16_s22, 6   ;;  %s2749_s19 = smov %s2247_s21 }
0x15df   : > { %s2750_s20 = smov %s2753_s23  ;;  %s2751_s21 = smov %s2757_s24 }
0x15e0   :  { %15 = sbr.rel (!%p13_p9) target bundleno = 3 (0x3), region = 88 }

</bundles_post_ra>
